<compile_context>
chip_gen: v7x
topology: tpu7x:2x2x1
jax: 0.10.0
libtpu: 0.0.40
codegen_flags: <defaults>
</compile_context>

<pallas_src>
import functools

import numpy as np
import jax
import jax.numpy as jnp
from jax.experimental import pallas as pl
from jax.experimental.pallas import tpu as pltpu


def _ru(a, m):
    return -(-a // m) * m


def _upsample_kernel(x_ref, w_ref, b_ref, o_ref, *, wq, hwq_pad, cout_pad,
                     norm, activation, eps, n_valid, n_extra):
    """One batch sample per grid step.

    x_ref: (1, Lflat, Cin)          flattened zero-padded input (single copy, no im2col).
    w_ref: (4, Cin, 4*Cout_pad)     plane k multiplies shifted window k; column blocks
                                    are the 4 output-parity planes [P00|P01|P10|P11].
    b_ref: (1, 4*Cout_pad)          bias pre-tiled across the 4 parity blocks (f32).
    o_ref: (1, hwq_pad, 4*Cout_pad) normalized + activated parity planes.
    """
    f32 = jnp.float32
    b4 = b_ref[...].astype(f32)                               # (1, 4*cout_pad)

    # Transposed conv: one MXU matmul per shifted input window.  Each window is a
    # contiguous row slice of the flattened zero-padded input:
    #   offset wq+1 -> x~[p, q]      offset wq -> x~[p, q-1]
    #   offset 1    -> x~[p-1, q]    offset 0  -> x~[p-1, q-1]
    acc = None
    for k, off in enumerate((wq + 1, wq, 1, 0)):
        xw = x_ref[0, off:off + hwq_pad, :]                   # (hwq_pad, cin)
        pk = jnp.dot(xw, w_ref[k], preferred_element_type=f32)
        acc = pk if acc is None else acc + pk
    P = acc + b4                                              # (hwq_pad, 4*cout_pad) f32

    if norm:
        cp = cout_pad
        s1 = jnp.zeros((1, 4 * cp), f32)
        s2 = jnp.zeros((1, 4 * cp), f32)
        # f32 VPU reductions (not MXU M=1 matmuls), chunked so the squared temp is
        # only chunk-sized.
        start = 0
        while start < hwq_pad:
            stop = min(start + 512, hwq_pad)
            c = P[start:stop, :]
            s1 = s1 + jnp.sum(c, axis=0, keepdims=True)
            s2 = s2 + jnp.sum(c * c, axis=0, keepdims=True)
            start = stop
        # Fold the 4 parity blocks into per-channel totals.
        S = s1[:, 0:cp] + s1[:, cp:2 * cp] + s1[:, 2 * cp:3 * cp] + s1[:, 3 * cp:4 * cp]
        SS = s2[:, 0:cp] + s2[:, cp:2 * cp] + s2[:, 2 * cp:3 * cp] + s2[:, 3 * cp:4 * cp]
        # Positions outside the real (2H+1, 2W+1) uncropped output evaluate to exactly
        # `bias` (their input reads hit exact zero padding in bf16/f32), so they are
        # removed in closed form; the stats then match InstanceNorm2d over the full
        # uncropped deconv output.
        b1 = b4[:, 0:cp]
        S = S - n_extra * b1
        SS = SS - n_extra * (b1 * b1)
        mean = S * (1.0 / n_valid)
        var = jnp.maximum(SS * (1.0 / n_valid) - mean * mean, 0.0)
        inv = jax.lax.rsqrt(var + eps)
        mean4 = jnp.concatenate([mean] * 4, axis=1)
        inv4 = jnp.concatenate([inv] * 4, axis=1)
        P = (P - mean4) * inv4

    if activation == "relu":
        P = jnp.maximum(P, 0.0)
    else:
        P = jnp.tanh(P)
    o_ref[0] = P.astype(o_ref.dtype)


def upsample_forward(x_nchw, weight, bias, *, norm=True, activation="relu", eps=1e-5,
                     operand_dtype=jnp.bfloat16, out_dtype=jnp.float32,
                     channels_last=False):
    """x_nchw: (N, Cin, H, W); weight: (Cin, Cout, 3, 3) [PyTorch ConvTranspose2d layout];
    bias: (Cout,).  Returns (N, Cout, 2H, 2W) in `out_dtype` (NCHW unless channels_last)."""
    assert activation in ("relu", "tanh")
    N, cin, H, W = (int(d) for d in x_nchw.shape)
    cout = int(weight.shape[1])
    Hp, Wq = H + 1, W + 2                        # parity-plane height / width (flat layout)
    op_b = np.dtype(operand_dtype).itemsize
    sub = 16 if op_b == 2 else 8                 # bf16 sublane tile is (16, 128)
    hwq = Hp * Wq
    hwq_pad = _ru(hwq, sub)
    rows_tot = -(-(hwq_pad + Wq + 1) // Wq)      # window slices read up to hwq_pad+Wq
    lflat = rows_tot * Wq
    cpad4 = _ru(4 * cout, 128)                   # lane-dense output slab (>=128, mult of 128)
    cout_pad = cpad4 // 4

    # ---- layout glue: ONE zero-padded input, flattened (no 4x im2col inflation) ----
    x_nhwc = jnp.transpose(x_nchw, (0, 2, 3, 1)).astype(operand_dtype)      # (N,H,W,Cin)
    xpad = jnp.pad(x_nhwc, ((0, 0), (1, rows_tot - 1 - H), (1, 1), (0, 0)))  # (N,rows,Wq,Cin)
    xflat = xpad.reshape(N, lflat, cin)

    # ---- fused weights (4, Cin, 4*Cout_pad): plane k multiplies window k; column
    #      blocks are the 4 output-parity planes [P00 | P01 | P10 | P11] ----
    w = weight.astype(jnp.float32)
    Z = jnp.zeros((cin, cout), jnp.float32)
    pad_c = lambda blk: jnp.pad(blk, ((0, 0), (0, cout_pad - cout)))
    row = lambda blocks: jnp.concatenate([pad_c(blk) for blk in blocks], axis=1)
    wfull = jnp.stack([
        row([w[:, :, 0, 0], w[:, :, 0, 1], w[:, :, 1, 0], w[:, :, 1, 1]]),   # x~[p,   q  ]
        row([w[:, :, 0, 2], Z,             w[:, :, 1, 2], Z]),               # x~[p,   q-1]
        row([w[:, :, 2, 0], w[:, :, 2, 1], Z,             Z]),               # x~[p-1, q  ]
        row([w[:, :, 2, 2], Z,             Z,             Z]),               # x~[p-1, q-1]
    ], axis=0).astype(operand_dtype)                                         # (4,Cin,4*Cout_pad)

    bias_p = jnp.pad(bias.astype(jnp.float32), (0, cout_pad - cout)).reshape(1, cout_pad)
    b4 = jnp.concatenate([bias_p] * 4, axis=1)            # pre-tiled bias (hoisted)

    n_valid = float((2 * H + 1) * (2 * W + 1))            # real uncropped output pixels
    n_extra = float(4 * hwq_pad) - n_valid                # phantom pixels (each == bias)

    slab_dtype = operand_dtype if op_b == 2 else jnp.float32
    slab_b = np.dtype(slab_dtype).itemsize

    # Explicit scoped-VMEM budget from the actual block footprint (double-buffered
    # blocks in tiled layout + live f32 temps), clamped to stay portable on v5e/v6e/v7x.
    x_blk = _ru(lflat, sub) * _ru(cin, 128) * op_b
    w_blk = 4 * _ru(cin, sub) * cpad4 * op_b
    b_blk = 8 * cpad4 * 4
    o_blk = _ru(hwq_pad, 16 if slab_b == 2 else 8) * cpad4 * slab_b
    temps = (4 * hwq_pad * _ru(cin, 128) * op_b            # the four window loads
             + 3 * hwq_pad * cpad4 * 4                      # P + normalize/activate temps
             + 512 * cpad4 * 4)                             # chunked stats square
    vmem_limit = int(min(max(2 * (x_blk + w_blk + b_blk + o_blk) + temps + (8 << 20),
                             32 << 20), 64 << 20))

    kernel = functools.partial(
        _upsample_kernel, wq=Wq, hwq_pad=hwq_pad, cout_pad=cout_pad, norm=norm,
        activation=activation, eps=eps, n_valid=n_valid, n_extra=n_extra)

    # TODO-perf: add a spatial row-tile grid axis + two-pass norm for very large H*W*C.
    slab = pl.pallas_call(
        kernel,
        out_shape=jax.ShapeDtypeStruct((N, hwq_pad, cpad4), slab_dtype),
        grid=(N,),
        in_specs=[
            pl.BlockSpec((1, lflat, cin), lambda n: (n, 0, 0)),
            pl.BlockSpec((4, cin, cpad4), lambda n: (0, 0, 0)),
            pl.BlockSpec((1, cpad4), lambda n: (0, 0)),
        ],
        out_specs=pl.BlockSpec((1, hwq_pad, cpad4), lambda n: (n, 0, 0)),
        compiler_params=pltpu.CompilerParams(
            dimension_semantics=("parallel",),
            vmem_limit_bytes=vmem_limit),
    )(xflat, wfull, b4)

    # ---- layout glue: crop + interleave the 4 parity planes back to the module output ----
    planes = slab[:, :hwq, :].reshape(N, Hp, Wq, 4, cout_pad)[..., :cout]
    P00, P01, P10, P11 = (planes[..., k, :] for k in range(4))
    A = P11[:, :H, :W, :]           # cropped[2p,   2q  ] = full[2p+1, 2q+1]
    B = P10[:, :H, 1:W + 1, :]      # cropped[2p,   2q+1] = full[2p+1, 2q+2]
    C = P01[:, 1:, :W, :]           # cropped[2p+1, 2q  ] = full[2p+2, 2q+1]
    D = P00[:, 1:, 1:W + 1, :]      # cropped[2p+1, 2q+1] = full[2p+2, 2q+2]
    even = jnp.stack([A, B], axis=3)            # (N, H, W, 2, C)
    odd = jnp.stack([C, D], axis=3)
    out = jnp.stack([even, odd], axis=2)        # (N, H, 2, W, 2, C)
    out = out.reshape(N, 2 * H, 2 * W, cout).astype(out_dtype)
    if channels_last:
        return out                               # NHWC: skips the final transpose pass
    return jnp.transpose(out, (0, 3, 1, 2))      # NCHW to match the PyTorch module


def upsample_reference(x, weight, bias, norm=True, activation="relu", eps=1e-5):
    """Pure NumPy reference matching the PyTorch module exactly (float64)."""
    x = np.asarray(x, np.float64)
    w = np.asarray(weight, np.float64)
    b = np.asarray(bias, np.float64)
    N, cin, H, W = x.shape
    cout = w.shape[1]
    full = np.zeros((N, cout, 2 * H + 1, 2 * W + 1), np.float64)
    for kh in range(3):
        for kw in range(3):
            contrib = np.einsum("nihw,io->nohw", x, w[:, :, kh, kw])
            full[:, :, kh:kh + 2 * H:2, kw:kw + 2 * W:2] += contrib
    full += b[None, :, None, None]
    if norm:
        mean = full.mean(axis=(2, 3), keepdims=True)
        var = full.var(axis=(2, 3), keepdims=True)      # biased, like InstanceNorm2d
        full = (full - mean) / np.sqrt(var + eps)
    if activation == "relu":
        full = np.maximum(full, 0.0)
    else:
        full = np.tanh(full)
    return full[:, :, 1:, 1:]


if __name__ == "__main__":
    key = jax.random.PRNGKey(0)
    k1, k2, k3, k4, k5, k6 = jax.random.split(key, 6)

    # --- Config 1: norm + relu, bf16 matmul operands + bf16 output slab ---
    N, cin, cout, H, W = 2, 4, 8, 16, 16
    x = jax.random.normal(k1, (N, cin, H, W), jnp.float32)
    weight = jax.random.normal(k2, (cin, cout, 3, 3), jnp.float32) * 0.2   # (Cin,Cout,kH,kW)
    bias = jax.random.normal(k3, (cout,), jnp.float32) * 0.1

    out = upsample_forward(x, weight, bias, norm=True, activation="relu",
                           operand_dtype=jnp.bfloat16)
    out = jax.block_until_ready(out)
    ref = upsample_reference(x, weight, bias, norm=True, activation="relu")
    assert out.shape == (N, cout, 2 * H, 2 * W), out.shape
    # Tolerance reflects bf16 operands on the MXU path + bf16 output slab
    # (accumulation and normalization statistics are f32).
    np.testing.assert_allclose(np.asarray(out), ref, rtol=3e-2, atol=3e-2)

    # --- Config 2: no norm, tanh, odd/unaligned shapes, f32 operands ---
    N2, cin2, cout2, H2, W2 = 1, 6, 5, 7, 9
    x2 = jax.random.normal(k4, (N2, cin2, H2, W2), jnp.float32)
    w2 = jax.random.normal(k5, (cin2, cout2, 3, 3), jnp.float32) * 0.2
    b2 = jax.random.normal(k6, (cout2,), jnp.float32) * 0.1

    out2 = upsample_forward(x2, w2, b2, norm=False, activation="tanh",
                            operand_dtype=jnp.float32)
    out2 = jax.block_until_ready(out2)
    ref2 = upsample_reference(x2, w2, b2, norm=False, activation="tanh")
    assert out2.shape == (N2, cout2, 2 * H2, 2 * W2), out2.shape
    np.testing.assert_allclose(np.asarray(out2), ref2, rtol=3e-2, atol=3e-2)

    print("KERNEL_OK")
</pallas_src>

<mosaic_0001>
module attributes {stable_mosaic.version = 11 : i64} {
  func.func @_upsample_kernel(%arg0: i32, %arg1: memref<1x342x4xbf16, #tpu.memory_space<vmem>>, %arg2: memref<4x4x128xbf16, #tpu.memory_space<vmem>>, %arg3: memref<1x128xf32, #tpu.memory_space<vmem>>, %arg4: memref<1x320x128xbf16, #tpu.memory_space<vmem>>) attributes {dimension_semantics = [#tpu.dimension_semantics<parallel>], iteration_bounds = array<i64: 2>, scalar_prefetch = 0 : i64, scratch_operands = 0 : i64, tpu.core_type = #tpu.core_type<tc>, window_params = [{transform_indices = @transform_0, window_bounds = array<i64: 1, 342, 4>}, {pipeline_mode = #tpu.pipeline_mode<synchronous>, transform_indices = @transform_1, window_bounds = array<i64: 4, 4, 128>}, {pipeline_mode = #tpu.pipeline_mode<synchronous>, transform_indices = @transform_2, window_bounds = array<i64: 1, 128>}, {transform_indices = @transform_3, window_bounds = array<i64: 1, 320, 128>}]} {
    %c0 = arith.constant 0 : index
    %c0_0 = arith.constant 0 : index
    %0 = vector.load %arg3[%c0, %c0_0] : memref<1x128xf32, #tpu.memory_space<vmem>>, vector<1x128xf32>
    %c0_1 = arith.constant 0 : index
    %c19 = arith.constant 19 : index
    %c0_2 = arith.constant 0 : index
    %1 = vector.load %arg1[%c0_1, %c19, %c0_2] : memref<1x342x4xbf16, #tpu.memory_space<vmem>>, vector<1x320x4xbf16>
    %2 = vector.shape_cast %1 : vector<1x320x4xbf16> to vector<320x4xbf16>
    %c0_3 = arith.constant 0 : index
    %c0_4 = arith.constant 0 : index
    %c0_5 = arith.constant 0 : index
    %3 = vector.load %arg2[%c0_3, %c0_4, %c0_5] : memref<4x4x128xbf16, #tpu.memory_space<vmem>>, vector<1x4x128xbf16>
    %4 = vector.shape_cast %3 : vector<1x4x128xbf16> to vector<4x128xbf16>
    %cst = arith.constant dense<0.000000e+00> : vector<320x128xf32>
    %5 = tpu.matmul %2, %4, %cst {dimension_numbers = #tpu.dot_dimension_numbers<[1], [0], [0], [1], [0, 0, 1, 1], [], []>} : vector<320x4xbf16>, vector<4x128xbf16>, vector<320x128xf32> -> vector<320x128xf32>
    %c0_6 = arith.constant 0 : index
    %c18 = arith.constant 18 : index
    %c0_7 = arith.constant 0 : index
    %6 = vector.load %arg1[%c0_6, %c18, %c0_7] : memref<1x342x4xbf16, #tpu.memory_space<vmem>>, vector<1x320x4xbf16>
    %7 = vector.shape_cast %6 : vector<1x320x4xbf16> to vector<320x4xbf16>
    %c1 = arith.constant 1 : index
    %c0_8 = arith.constant 0 : index
    %c0_9 = arith.constant 0 : index
    %8 = vector.load %arg2[%c1, %c0_8, %c0_9] : memref<4x4x128xbf16, #tpu.memory_space<vmem>>, vector<1x4x128xbf16>
    %9 = vector.shape_cast %8 : vector<1x4x128xbf16> to vector<4x128xbf16>
    %cst_10 = arith.constant dense<0.000000e+00> : vector<320x128xf32>
    %10 = tpu.matmul %7, %9, %cst_10 {dimension_numbers = #tpu.dot_dimension_numbers<[1], [0], [0], [1], [0, 0, 1, 1], [], []>} : vector<320x4xbf16>, vector<4x128xbf16>, vector<320x128xf32> -> vector<320x128xf32>
    %11 = arith.addf %5, %10 : vector<320x128xf32>
    %c0_11 = arith.constant 0 : index
    %c1_12 = arith.constant 1 : index
    %c0_13 = arith.constant 0 : index
    %12 = vector.load %arg1[%c0_11, %c1_12, %c0_13] : memref<1x342x4xbf16, #tpu.memory_space<vmem>>, vector<1x320x4xbf16>
    %13 = vector.shape_cast %12 : vector<1x320x4xbf16> to vector<320x4xbf16>
    %c2 = arith.constant 2 : index
    %c0_14 = arith.constant 0 : index
    %c0_15 = arith.constant 0 : index
    %14 = vector.load %arg2[%c2, %c0_14, %c0_15] : memref<4x4x128xbf16, #tpu.memory_space<vmem>>, vector<1x4x128xbf16>
    %15 = vector.shape_cast %14 : vector<1x4x128xbf16> to vector<4x128xbf16>
    %cst_16 = arith.constant dense<0.000000e+00> : vector<320x128xf32>
    %16 = tpu.matmul %13, %15, %cst_16 {dimension_numbers = #tpu.dot_dimension_numbers<[1], [0], [0], [1], [0, 0, 1, 1], [], []>} : vector<320x4xbf16>, vector<4x128xbf16>, vector<320x128xf32> -> vector<320x128xf32>
    %17 = arith.addf %11, %16 : vector<320x128xf32>
    %c0_17 = arith.constant 0 : index
    %c0_18 = arith.constant 0 : index
    %c0_19 = arith.constant 0 : index
    %18 = vector.load %arg1[%c0_17, %c0_18, %c0_19] : memref<1x342x4xbf16, #tpu.memory_space<vmem>>, vector<1x320x4xbf16>
    %19 = vector.shape_cast %18 : vector<1x320x4xbf16> to vector<320x4xbf16>
    %c3 = arith.constant 3 : index
    %c0_20 = arith.constant 0 : index
    %c0_21 = arith.constant 0 : index
    %20 = vector.load %arg2[%c3, %c0_20, %c0_21] : memref<4x4x128xbf16, #tpu.memory_space<vmem>>, vector<1x4x128xbf16>
    %21 = vector.shape_cast %20 : vector<1x4x128xbf16> to vector<4x128xbf16>
    %cst_22 = arith.constant dense<0.000000e+00> : vector<320x128xf32>
    %22 = tpu.matmul %19, %21, %cst_22 {dimension_numbers = #tpu.dot_dimension_numbers<[1], [0], [0], [1], [0, 0, 1, 1], [], []>} : vector<320x4xbf16>, vector<4x128xbf16>, vector<320x128xf32> -> vector<320x128xf32>
    %23 = arith.addf %17, %22 : vector<320x128xf32>
    %24 = vector.broadcast %0 : vector<1x128xf32> to vector<320x128xf32>
    %25 = arith.addf %23, %24 : vector<320x128xf32>
    %cst_23 = arith.constant 0.000000e+00 : f32
    %26 = vector.broadcast %cst_23 : f32 to vector<1x128xf32>
    %cst_24 = arith.constant 0.000000e+00 : f32
    %27 = vector.broadcast %cst_24 : f32 to vector<1x128xf32>
    %cst_25 = arith.constant dense<0.000000e+00> : vector<128xf32>
    %28 = vector.multi_reduction <add>, %25, %cst_25 [0] : vector<320x128xf32> to vector<128xf32>
    %29 = vector.shape_cast %28 : vector<128xf32> to vector<1x128xf32>
    %30 = arith.addf %26, %29 : vector<1x128xf32>
    %31 = arith.mulf %25, %25 : vector<320x128xf32>
    %cst_26 = arith.constant dense<0.000000e+00> : vector<128xf32>
    %32 = vector.multi_reduction <add>, %31, %cst_26 [0] : vector<320x128xf32> to vector<128xf32>
    %33 = vector.shape_cast %32 : vector<128xf32> to vector<1x128xf32>
    %34 = arith.addf %27, %33 : vector<1x128xf32>
    %35 = vector.extract_strided_slice %30 {offsets = [0, 0], sizes = [1, 32], strides = [1, 1]} : vector<1x128xf32> to vector<1x32xf32>
    %36 = vector.extract_strided_slice %30 {offsets = [0, 32], sizes = [1, 32], strides = [1, 1]} : vector<1x128xf32> to vector<1x32xf32>
    %37 = arith.addf %35, %36 : vector<1x32xf32>
    %38 = vector.extract_strided_slice %30 {offsets = [0, 64], sizes = [1, 32], strides = [1, 1]} : vector<1x128xf32> to vector<1x32xf32>
    %39 = arith.addf %37, %38 : vector<1x32xf32>
    %40 = vector.extract_strided_slice %30 {offsets = [0, 96], sizes = [1, 32], strides = [1, 1]} : vector<1x128xf32> to vector<1x32xf32>
    %41 = arith.addf %39, %40 : vector<1x32xf32>
    %42 = vector.extract_strided_slice %34 {offsets = [0, 0], sizes = [1, 32], strides = [1, 1]} : vector<1x128xf32> to vector<1x32xf32>
    %43 = vector.extract_strided_slice %34 {offsets = [0, 32], sizes = [1, 32], strides = [1, 1]} : vector<1x128xf32> to vector<1x32xf32>
    %44 = arith.addf %42, %43 : vector<1x32xf32>
    %45 = vector.extract_strided_slice %34 {offsets = [0, 64], sizes = [1, 32], strides = [1, 1]} : vector<1x128xf32> to vector<1x32xf32>
    %46 = arith.addf %44, %45 : vector<1x32xf32>
    %47 = vector.extract_strided_slice %34 {offsets = [0, 96], sizes = [1, 32], strides = [1, 1]} : vector<1x128xf32> to vector<1x32xf32>
    %48 = arith.addf %46, %47 : vector<1x32xf32>
    %49 = vector.extract_strided_slice %0 {offsets = [0, 0], sizes = [1, 32], strides = [1, 1]} : vector<1x128xf32> to vector<1x32xf32>
    %cst_27 = arith.constant 1.910000e+02 : f32
    %50 = vector.broadcast %cst_27 : f32 to vector<1x32xf32>
    %51 = arith.mulf %50, %49 : vector<1x32xf32>
    %52 = arith.subf %41, %51 : vector<1x32xf32>
    %53 = arith.mulf %49, %49 : vector<1x32xf32>
    %cst_28 = arith.constant 1.910000e+02 : f32
    %54 = vector.broadcast %cst_28 : f32 to vector<1x32xf32>
    %55 = arith.mulf %54, %53 : vector<1x32xf32>
    %56 = arith.subf %48, %55 : vector<1x32xf32>
    %cst_29 = arith.constant 9.18273639E-4 : f32
    %57 = vector.broadcast %cst_29 : f32 to vector<1x32xf32>
    %58 = arith.mulf %52, %57 : vector<1x32xf32>
    %cst_30 = arith.constant 9.18273639E-4 : f32
    %59 = vector.broadcast %cst_30 : f32 to vector<1x32xf32>
    %60 = arith.mulf %56, %59 : vector<1x32xf32>
    %61 = arith.mulf %58, %58 : vector<1x32xf32>
    %62 = arith.subf %60, %61 : vector<1x32xf32>
    %cst_31 = arith.constant 0.000000e+00 : f32
    %63 = vector.broadcast %cst_31 : f32 to vector<1x32xf32>
    %64 = arith.maximumf %62, %63 : vector<1x32xf32>
    %cst_32 = arith.constant 9.99999974E-6 : f32
    %65 = vector.broadcast %cst_32 : f32 to vector<1x32xf32>
    %66 = arith.addf %64, %65 : vector<1x32xf32>
    %67 = math.rsqrt %66 : vector<1x32xf32>
    %68 = tpu.concatenate %58, %58, %58, %58 in 1 : vector<1x32xf32>, vector<1x32xf32>, vector<1x32xf32>, vector<1x32xf32> -> vector<1x128xf32>
    %69 = tpu.concatenate %67, %67, %67, %67 in 1 : vector<1x32xf32>, vector<1x32xf32>, vector<1x32xf32>, vector<1x32xf32> -> vector<1x128xf32>
    %70 = vector.broadcast %68 : vector<1x128xf32> to vector<320x128xf32>
    %71 = arith.subf %25, %70 : vector<320x128xf32>
    %72 = vector.broadcast %69 : vector<1x128xf32> to vector<320x128xf32>
    %73 = arith.mulf %71, %72 : vector<320x128xf32>
    %cst_33 = arith.constant 0.000000e+00 : f32
    %74 = vector.broadcast %cst_33 : f32 to vector<320x128xf32>
    %75 = arith.maximumf %73, %74 : vector<320x128xf32>
    %76 = arith.truncf %75 : vector<320x128xf32> to vector<320x128xbf16>
    %c0_34 = arith.constant 0 : index
    %c0_35 = arith.constant 0 : index
    %c0_36 = arith.constant 0 : index
    %77 = vector.load %arg4[%c0_34, %c0_35, %c0_36] : memref<1x320x128xbf16, #tpu.memory_space<vmem>>, vector<1x320x128xbf16>
    %78 = vector.shape_cast %77 : vector<1x320x128xbf16> to vector<320x128xbf16>
    %79 = vector.shape_cast %76 : vector<320x128xbf16> to vector<1x320x128xbf16>
    tpu.vector_store %arg4[%c0_34, %c0_35, %c0_36], %79 {strides = array<i32>} : memref<1x320x128xbf16, #tpu.memory_space<vmem>>, vector<1x320x128xbf16>,
    return
  }
  func.func @transform_0(%arg0: i32) -> (i32, i32, i32) {
    %c0_i32 = arith.constant 0 : i32
    %c0_i32_0 = arith.constant 0 : i32
    %c0_i32_1 = arith.constant 0 : i32
    return %arg0, %c0_i32, %c0_i32_0 : i32, i32, i32
  }
  func.func @transform_1(%arg0: i32) -> (i32, i32, i32) {
    %c0_i32 = arith.constant 0 : i32
    %c0_i32_0 = arith.constant 0 : i32
    %c0_i32_1 = arith.constant 0 : i32
    %c0_i32_2 = arith.constant 0 : i32
    return %c0_i32, %c0_i32_0, %c0_i32_1 : i32, i32, i32
  }
  func.func @transform_2(%arg0: i32) -> (i32, i32) {
    %c0_i32 = arith.constant 0 : i32
    %c0_i32_0 = arith.constant 0 : i32
    %c0_i32_1 = arith.constant 0 : i32
    return %c0_i32, %c0_i32_0 : i32, i32
  }
  func.func @transform_3(%arg0: i32) -> (i32, i32, i32) {
    %c0_i32 = arith.constant 0 : i32
    %c0_i32_0 = arith.constant 0 : i32
    %c0_i32_1 = arith.constant 0 : i32
    return %arg0, %c0_i32, %c0_i32_0 : i32, i32, i32
  }
}

</mosaic_0001>

<bundles_post_ra>
// kernel: tpu_custom_call.1
= control target key start
LH: loop header
LB: loop body
LE: loop exit
PB: predicated region body
PF: predicated region fallthrough
CT: control target
= control target key end

     0   :  { %8 = vsyncpa [#allocation3], 0  ;;  %s4714_s0 = inlined_call_operand.vmem [shape: bf16[2,342,4], index: 0, kind: input, shape index: {}]   ;;  %s4715_s1 = inlined_call_operand.vmem [shape: bf16[4,4,128], index: 1, kind: input, shape index: {}]   ;;  %s4716_s2 = inlined_call_operand.vmem [shape: f32[1,128], index: 2, kind: input, shape index: {}]   ;;  %s4717_s3 = inlined_call_operand.hbm [shape: bf16[2,320,128], index: 3, kind: output, shape index: {}]  }
   0x1   :  { %10 = vsyncpa [#allocation3 + $0x1], 0  ;;  %s3690_s12 = smov 0   ;;  %s3692_s13 = smov 0  }
   0x2   :  { %s3694_s14 = smov 0   ;;  %s3696_s15 = smov 0  }
   0x3 LB: > { %s3711_s16 = sadd.s32 4294967295, %s3663_s15   ;;  %s2761_s17 = sadd.s32 4294967294, %s3663_s15   ;;  %s3663_s15 = sphi %s3696_s15, %s4723_s15   ;;  %s3659_s14 = sphi %s3694_s14, %s4722_s14   ;;  %s3655_s13 = sphi %s3692_s13, %s4721_s13   ;;  %s3651_s12 = sphi %s3690_s12, %s4720_s12  }
   0x4   : > { %s3715_s18 = sadd.s32 1, %s3663_s15   ;;  %s91_s19 = sadd.s32 1, %s3659_s14 }
   0x5   : > { %s88_s20 = ssub.s32 %s3663_s15, %s3715_s18  ;;  %p101_p0 = scmp.ne.s32.totalorder %s3659_s14, %s3655_s13 }
   0x6   : > { %p89_p1 = scmp.eq.s32.totalorder %s88_s20, 0  ;;  %p102_p2 = scmp.eq.s32.totalorder %s3711_s16, 1 }
   0x7   : > { %p107_p3 = scmp.ne.s32.totalorder %s3655_s13, %s3651_s12  ;;  %p108_p4 = scmp.eq.s32.totalorder %s2761_s17, 1 }
   0x8   : > { %s3726_s21 = scalar_select %p89_p1, %s3659_s14, %s91_s19  }
   0x9   : > { %p3728_p5 = por %p102_p2, %p101_p0  ;;  %p3732_p6 = por %p108_p4, %p107_p3 }
   0xa   : > { %p2764_p7 = scmp.ge.s32.totalorder %s3663_s15, 1  ;;  %p140_p8 = scmp.lt.s32.totalorder %s3663_s15, 3 }
   0xc   : > { %p141_p9 = pnand %p2764_p7, %p140_p8 }
   0xd   : > { %v2766_v0 = vld [vmem:[%s4715_s1 + $0x2] sm:$0x3] (!%p141_p9)  ;;  %vm422_vm0 = vcmask (!%p141_p9), 1041408   ;;  %p164_p10 = scmp.lt.s32.totalorder (!%p141_p9), %s3711_s16, 1  ;;  %v2829_v2 = vld [vmem:[%s4715_s1 + $0x4] sm:$0x3] (!%p141_p9) }
   0xe   : > { %144 = sbr.rel (%p141_p9) target bundleno = 741 (0x2e5), region = 32  ;;  %3486 = vmatprep.subr.msk.bf16.mxu1 (!%p141_p9), %vm422_vm0, %v2766_v0  ;;  %v424_v1 = vsel (!%p141_p9), %vm422_vm0, %v2766_v0, 0  ;;  %v212_v3 = vld [vmem:[%s4715_s1] sm:$0x3] (!%p141_p9)  ;;  %3488 = vmatprep.subr.msk.bf16.mxu0 (!%p141_p9), %vm422_vm0, %v2829_v2  ;;  %v1439_v4 = vsel (!%p141_p9), %vm422_vm0, %v2829_v2, 0  ;;  %vm319_vm1 = vcmask (!%p141_p9), 1046528  }
   0xf   : > { %3199 = vmatpush3.bf16.msra.mxu1 (!%p141_p9), %v424_v1  ;;  %v2871_v5 = vld [vmem:[%s4715_s1 + $0x6] sm:$0x3] (!%p141_p9)  ;;  %3283 = vmatpush3.bf16.msra.mxu0 (!%p141_p9), %v1439_v4  ;;  %vm361_vm2 = vcmask (!%p141_p9), 31744   ;;  %vm1213_vm3 = vsmask.f32 (!%p141_p9), 7424  ;;  %v872_v9 = vsel (!%p141_p9), %vm422_vm0, %v212_v3, 0 }
  0x10   : > { %3487 = vmatprep.subr.msk.bf16.mxu1 (!%p141_p9), %vm422_vm0, %v212_v3  ;;  %3489 = vmatprep.subr.msk.bf16.mxu0 (!%p141_p9), %vm422_vm0, %v2871_v5  ;;  %v1877_v16 = vsel (!%p141_p9), %vm422_vm0, %v2871_v5, 0  ;;  %vm622_vm4 = vsmask.f32 (!%p141_p9), 6400  ;;  %s3665_s17 = smov (!%p141_p9), 32   ;;  %s3666_s19 = smov (!%p141_p9), 96   ;;  %vm2338_vm5 = vcmask (!%p141_p9), 261120  }
  0x11   : > { %s3667_s20 = smov (!%p141_p9), 64   ;;  %vm2340_vm6 = vcmask (!%p141_p9), 523264   ;;  %vm2342_vm7 = vcmask (!%p141_p9), 785408   ;;  %s161_s24 = sand.u32 (!%p141_p9), 1, %s3655_s13  }
  0x12   : > { %s4611_s25 = smul.u32 (!%p141_p9), 160, %s161_s24  ;;  %s4671_s4 = scalar_lea.sflag (!%p141_p9), [#allocation3], %s161_s24 }
  0x13   : > { %s3492_s26 = smul.u32 (!%p141_p9), 2560, %s3711_s16 }
  0x14   : > { %s4639_s27 = scalar_lea.vmem (!%p141_p9), [#allocation2], %s4611_s25 }
  0x15   : > { %s165_s30 = scalar_select %p164_p10, %s3711_s16, 1 }
  0x16   : > { %s2699_s16 = sshll.u32 %s4639_s27, 4  ;;  %s4659_s16 = int_to_ptr.vmem [resolvable:$true] %s2699_s16 }
  0x17   : > { %s3491_s6 = smul.u32 172, %s165_s30  ;;  %s4653_s30 = scalar_lea.hbm %s4717_s3, %s3492_s26 }
  0x18   : > { %s3601_s5 = scalar_lea.vmem %s4659_s16, 2560 }
  0x19   : > { %s3761_s9 = scalar_lea.vmem %s4714_s0, %s3491_s6  ;;  %p3602_p11 = scmp.ne.s32.totalorder %s4659_s16, %s3601_s5 }
  0x1a   : > { %v3764_v6 = vld [vmem:[%s3761_s9 + $0x8] sm:$0xfe]   ;;  %v3767_v7 = vld [vmem:[%s3761_s9 + $0x10] sm:$0xff]   ;;  %v3770_v8 = vld [vmem:[%s3761_s9 + $0x18] sm:$0xff]   ;;  %s3668_s6 = smov [#allocation2]  }
  0x1b   : > { %v320_v10 = vrot.slane %v3764_v6, 1  ;;  %v321_v11 = vrot.slane %v3767_v7, 1  ;;  %v323_v12 = vrot.slane %v3770_v8, 1  ;;  %v3539_v13 = vld [vmem:[%s3761_s9] sm:$0xff]   ;;  %v3540_v15 = vld [vmem:[%s3761_s9 + $0x8] sm:$0xff]   ;;  %v3541_v20 = vld [vmem:[%s3761_s9 + $0x10] sm:$0xff]   ;;  %p3603_p12 = pnand %p3602_p11, %p3728_p5 }
  0x1c   : > { %v1215_v18 = vshrl.u32 %v3539_v13, 16  ;;  %v1217_v19 = vshll.u32 %v3539_v13, 16  ;;  %v3784_v21 = vld [vmem:[%s3761_s9 + $0x20] sm:$0xff]   ;;  %v1222_v22 = vshll.u32 %v3540_v15, 16  ;;  %v1226_v23 = vshrl.u32 %v3540_v15, 16  ;;  %v3789_v27 = vld [vmem:[%s3761_s9 + $0x28] sm:$0xff]  }
  0x1d   : > { %v322_v14 = vsel %vm319_vm1, %v320_v10, %v321_v11  ;;  %v324_v17 = vsel %vm319_vm1, %v321_v11, %v323_v12  ;;  %v1230_v25 = vshll.u32 %v3541_v20, 16  ;;  %v325_v26 = vrot.slane %v3784_v21, 1  ;;  %v3544_v29 = vld [vmem:[%s3761_s9 + $0x18] sm:$0xff]   ;;  %v3545_v37 = vld [vmem:[%s3761_s9 + $0x20] sm:$0xff]   ;;  %v3799_v41 = vld [vmem:[%s3761_s9 + $0x30] sm:$0xff]   ;;  %p3604_p13 = pneg %p3603_p12  ;;  %s3605_s7 = sshll.u32 %s3668_s6, 4  ;;  %s3606_s7 = int_to_ptr.vmem [resolvable:$false] %s3605_s7 }
  0x1e   : > { %3200 = vmatprep.mubr.msk.bf16.mxu1 %vm361_vm2, %v322_v14  ;;  %v1219_v24 = vrot.slane %v1217_v19, 1  ;;  %v1224_v28 = vrot.slane %v1222_v22, 1  ;;  %v327_v33 = vrot.slane %v3789_v27, 1  ;;  %v1234_v35 = vshrl.u32 %v3541_v20, 16  ;;  %v3805_v47 = vld [vmem:[%s3761_s9 + $0x38] sm:$0xff]   ;;  %v3548_v48 = vld [vmem:[%s3761_s9 + $0x28] sm:$0xff]   ;;  %p3608_p0 = scmp.lt.s32.totalorder %s4659_s16, %s3606_s7 }
  0x1f   : > { %3201 = vmatmul.mubr.msk.bf16.vlgmr.msra.gmra.mrb[0].mxu1 %vm361_vm2, %v324_v17  ;;  %v1232_v31 = vrot.slane %v1230_v25, 1  ;;  %v326_v32 = vsel %vm319_vm1, %v323_v12, %v325_v26  ;;  %v1238_v36 = vshll.u32 %v3544_v29, 16  ;;  %v1242_v38 = vshrl.u32 %v3544_v29, 16  ;;  %v3549_v57 = vld [vmem:[%s3761_s9 + $0x30] sm:$0xff]   ;;  %v3817_v59 = vld [vmem:[%s3761_s9 + $0x40] sm:$0xff]   ;;  %v3822_v0 = vld [vmem:[%s3761_s9 + $0x48] sm:$0xff]  }
  0x20   : > { %3241 = vmatpush3.bf16.msra.mxu1 %v872_v9  ;;  %v1220_v30 = vor.u32 %v1219_v24, %v1215_v18  ;;  %v1228_v34 = vor.u32 %v1226_v23, %v1224_v28  ;;  %3204 = vmatprep.mubr.msk.bf16.mxu1 %vm361_vm2, %v326_v32  ;;  %v328_v40 = vsel %vm319_vm1, %v325_v26, %v327_v33  ;;  %v624_v42 = vshrl.u32 %v3764_v6, 16  ;;  %v3552_v2 = vld [vmem:[%s3761_s9 + $0x38] sm:$0xff]   ;;  %v3553_v9 = vld [vmem:[%s3761_s9 + $0x40] sm:$0xff]   ;;  %v3834_v15 = vld [vmem:[%s3761_s9 + $0x50] sm:$0xff]   ;;  %s3607_s8 = scalar_lea.vmem %s3606_s7, 5120 }
  0x21   : > { %v1236_v44 = vor.u32 %v1234_v35, %v1232_v31  ;;  %v1240_v45 = vrot.slane %v1238_v36, 1  ;;  %v1246_v46 = vshll.u32 %v3545_v37, 16  ;;  %v329_v49 = vrot.slane %v3799_v41, 1  ;;  %v3838_v17 = vld [vmem:[%s3761_s9 + $0x58] sm:$0xff]   ;;  %v3556_v26 = vld [vmem:[%s3761_s9 + $0x48] sm:$0xff]   ;;  %v3557_v29 = vld [vmem:[%s3761_s9 + $0x50] sm:$0xff]   ;;  %p3609_p1 = scmp.lt.s32.totalorder %s3607_s8, %s3601_s5 }
  0x22   : > { %v1225_v39 = vsel %vm1213_vm3, %v1220_v30, %v1224_v28  ;;  %v1233_v43 = vsel %vm1213_vm3, %v1228_v34, %v1232_v31  ;;  %v1250_v50 = vshrl.u32 %v3545_v37, 16  ;;  %v331_v54 = vrot.slane %v3805_v47, 1  ;;  %v3848_v31 = vld [vmem:[%s3761_s9 + $0x60] sm:$0xff]   ;;  %v3851_v32 = vld [vmem:[%s3761_s9 + $0x68] sm:$0xff]  }
  0x23   : > { %3284 = vmatprep.mubr.msk.bf16.mxu0 %vm361_vm2, %v1225_v39  ;;  %v1241_v51 = vsel %vm1213_vm3, %v1236_v44, %v1240_v45  ;;  %v1244_v52 = vor.u32 %v1242_v38, %v1240_v45  ;;  %v1248_v53 = vrot.slane %v1246_v46, 1  ;;  %v330_v55 = vsel %vm319_vm1, %v327_v33, %v329_v49  ;;  %v3560_v38 = vld [vmem:[%s3761_s9 + $0x58] sm:$0xff]   ;;  %p3610_p2 = por %p3609_p1, %p3608_p0 }
  0x24   : > { %3285 = vmatmul.mubr.msk.bf16.vlgmr.msra.gmra.mrb[0].mxu0 %vm361_vm2, %v1233_v43  ;;  %v1254_v56 = vshll.u32 %v3548_v48, 16  ;;  %v1258_v58 = vshrl.u32 %v3548_v48, 16  ;;  %v1262_v62 = vshll.u32 %v3549_v57, 16  ;;  %v333_v63 = vrot.slane %v3817_v59, 1 }
  0x25   : > { %3325 = vmatpush3.bf16.msra.mxu0 %v1877_v16  ;;  %3288 = vmatprep.mubr.msk.bf16.mxu0 %vm361_vm2, %v1241_v51  ;;  %v1252_v60 = vor.u32 %v1250_v50, %v1248_v53  ;;  %v1249_v1 = vsel %vm1213_vm3, %v1244_v52, %v1248_v53  ;;  %v1266_v3 = vshrl.u32 %v3549_v57, 16  ;;  %v332_v4 = vsel %vm319_vm1, %v329_v49, %v331_v54  ;;  %v3561_v49 = vld [vmem:[%s3761_s9 + $0x60] sm:$0xff]   ;;  %v3866_v53 = vld [vmem:[%s3761_s9 + $0x70] sm:$0xff]   ;;  %v3564_v57 = vld [vmem:[%s3761_s9 + $0x68] sm:$0xff]   ;;  %p3611_p3 = pnand %p3610_p2, %p3604_p13 }
  0x26   : > { %v1256_v61 = vrot.slane %v1254_v56, 1  ;;  %v3829_v10 = vrot.slane %v624_v42, 1  ;;  %v1264_v11 = vrot.slane %v1262_v62, 1  ;;  %v334_v12 = vsel %vm319_vm1, %v331_v54, %v333_v63  ;;  %v3869_v54 = vld [vmem:[%s3761_s9 + $0x78] sm:$0xff]  }
  0x27   : > { %3205 = vmatmul.mubr.msk.bf16.gmra.mrb[4].mxu1 %vm361_vm2, %v328_v40  ;;  %v335_v13 = vrot.slane %v3822_v0, 1  ;;  %v1270_v14 = vshll.u32 %v3552_v2, 16  ;;  %v1278_v16 = vshll.u32 %v3553_v9, 16  ;;  %v1274_v22 = vshrl.u32 %v3552_v2, 16 }
  0x28   : > { %3208 = vmatprep.mubr.msk.bf16.mxu1 %vm361_vm2, %v330_v55  ;;  %v1257_v5 = vsel %vm1213_vm3, %v1252_v60, %v1256_v61  ;;  %v1260_v18 = vor.u32 %v1258_v58, %v1256_v61  ;;  %v1268_v19 = vor.u32 %v1266_v3, %v1264_v11  ;;  %v337_v24 = vrot.slane %v3834_v15, 1 }
  0x29   : > { %v1272_v20 = vrot.slane %v1270_v14, 1  ;;  %v1280_v23 = vrot.slane %v1278_v16, 1  ;;  %v339_v25 = vrot.slane %v3838_v17, 1  ;;  %v1282_v28 = vshrl.u32 %v3553_v9, 16 }
  0x2a   : > { %v1286_v30 = vshll.u32 %v3556_v26, 16  ;;  %v627_v33 = vshll.u32 %v3764_v6, 16  ;;  %v1265_v34 = vsel %vm1213_vm3, %v1260_v18, %v1264_v11  ;;  %v336_v35 = vsel %vm319_vm1, %v333_v63, %v335_v13  ;;  %v3885_v18 = vld [vmem:[%s3761_s9 + $0x88] sm:$0xff]  }
  0x2b   : > { %v1273_v36 = vsel %vm1213_vm3, %v1268_v19, %v1272_v20  ;;  %v1294_v37 = vshll.u32 %v3557_v29, 16  ;;  %v1290_v40 = vshrl.u32 %v3556_v26, 16  ;;  %v341_v42 = vrot.slane %v3848_v31, 1  ;;  %v3569_v26 = vld [vmem:[%s3761_s9 + $0x80] sm:$0xff]  }
  0x2c   : > { %3289 = vmatmul.mubr.msk.bf16.gmra.mrb[4].mxu0 %vm361_vm2, %v1249_v1  ;;  %v1288_v39 = vrot.slane %v1286_v30, 1  ;;  %v343_v43 = vrot.slane %v3851_v32, 1  ;;  %v338_v44 = vsel %vm319_vm1, %v335_v13, %v337_v24  ;;  %v1298_v45 = vshrl.u32 %v3557_v29, 16  ;;  %v3565_v1 = vld [vmem:[%s3761_s9 + $0x70] sm:$0xff]  }
  0x2d   : > { %3292 = vmatprep.mubr.msk.bf16.mxu0 %vm361_vm2, %v1257_v5  ;;  %v1302_v46 = vshll.u32 %v3560_v38, 16  ;;  %v1296_v48 = vrot.slane %v1294_v37, 1  ;;  %v1276_v50 = vor.u32 %v1274_v22, %v1272_v20  ;;  %v1306_v52 = vshrl.u32 %v3560_v38, 16  ;;  %v3568_v22 = vld [vmem:[%s3761_s9 + $0x78] sm:$0xff]  }
  0x2e   : > { %v1284_v55 = vor.u32 %v1282_v28, %v1280_v23  ;;  %v1310_v56 = vshll.u32 %v3561_v49, 16  ;;  %v345_v58 = vrot.slane %v3866_v53, 1  ;;  %v347_v60 = vrot.slane %v3869_v54, 1  ;;  %v3894_v28 = vld [vmem:[%s3761_s9 + $0x90] sm:$0xff]  }
  0x2f   : > { %3209 = vmatmul.mubr.msk.bf16.gmra.mrb[8].mxu1 %vm361_vm2, %v332_v4  ;;  %v1304_v51 = vrot.slane %v1302_v46, 1  ;;  %v1314_v62 = vshrl.u32 %v3561_v49, 16  ;;  %v1318_v63 = vshll.u32 %v3564_v57, 16  ;;  %v1281_v2 = vsel %vm1213_vm3, %v1276_v50, %v1280_v23  ;;  %v3878_v4 = vld [vmem:[%s3761_s9 + $0x80] sm:$0xff]   ;;  %v3903_v46 = vld [vmem:[%s3761_s9 + $0x98] sm:$0xff]  }
  0x30   : > { %3212 = vmatprep.mubr.msk.bf16.mxu1 %vm361_vm2, %v334_v12  ;;  %v1312_v61 = vrot.slane %v1310_v56, 1  ;;  %v1322_v3 = vshrl.u32 %v3564_v57, 16  ;;  %v340_v5 = vsel %vm319_vm1, %v337_v24, %v339_v25  ;;  %v1289_v9 = vsel %vm1213_vm3, %v1284_v55, %v1288_v39 }
  0x31   : > { %v1320_v11 = vrot.slane %v1318_v63, 1  ;;  %v1326_v12 = vshll.u32 %v3565_v1, 16  ;;  %v1292_v13 = vor.u32 %v1290_v40, %v1288_v39  ;;  %v342_v14 = vsel %vm319_vm1, %v339_v25, %v341_v42 }
  0x32   : > { %v349_v16 = vrot.slane %v3878_v4, 1  ;;  %v1300_v19 = vor.u32 %v1298_v45, %v1296_v48  ;;  %v1330_v23 = vshrl.u32 %v3565_v1, 16  ;;  %v351_v24 = vrot.slane %v3885_v18, 1 }
  0x33   : > { %v1328_v20 = vrot.slane %v1326_v12, 1  ;;  %v1308_v25 = vor.u32 %v1306_v52, %v1304_v51  ;;  %v1316_v29 = vor.u32 %v1314_v62, %v1312_v61  ;;  %v1334_v30 = vshll.u32 %v3568_v22, 16  ;;  %v3912_v62 = vld [vmem:[%s3761_s9 + $0xa0] sm:$0xff]   ;;  %v3575_v12 = vld [vmem:[%s3761_s9 + $0xa8] ss:$0 sps:$4 sm:$0x11]  }
  0x34   : > { %3293 = vmatmul.mubr.msk.bf16.gmra.mrb[8].mxu0 %vm361_vm2, %v1265_v34  ;;  %v1338_v34 = vshrl.u32 %v3568_v22, 16  ;;  %v1342_v37 = vshll.u32 %v3569_v26, 16  ;;  %v353_v38 = vrot.slane %v3894_v28, 1  ;;  %v1305_v39 = vsel %vm1213_vm3, %v1300_v19, %v1304_v51 }
  0x35   : > { %3296 = vmatprep.mubr.msk.bf16.mxu0 %vm361_vm2, %v1273_v36  ;;  %v344_v36 = vsel %vm319_vm1, %v341_v42, %v343_v43  ;;  %v346_v40 = vsel %vm319_vm1, %v343_v43, %v345_v58  ;;  %v1336_v45 = vrot.slane %v1334_v30, 1  ;;  %v348_v49 = vsel %vm319_vm1, %v345_v58, %v347_v60  ;;  %v3573_v42 = vld [vmem:[%s3761_s9 + $0x90] sm:$0xff]  }
  0x36   : > { %v1332_v50 = vor.u32 %v1330_v23, %v1328_v20  ;;  %v1344_v52 = vrot.slane %v1342_v37, 1  ;;  %v1346_v55 = vshrl.u32 %v3569_v26, 16  ;;  %v1313_v56 = vsel %vm1213_vm3, %v1308_v25, %v1312_v61  ;;  %v3941_v25 = vld [vmem:[%s3761_s9 + $0xa0] ss:$0 sps:$4 sm:$0x11]  }
  0x37   : > { %3213 = vmatmul.mubr.msk.bf16.gmra.mrb[12].mxu1 %vm361_vm2, %v336_v35  ;;  %v1297_v35 = vsel %vm1213_vm3, %v1292_v13, %v1296_v48  ;;  %v3572_v48 = vld [vmem:[%s3761_s9 + $0x88] sm:$0xff]   ;;  %v1321_v57 = vsel %vm1213_vm3, %v1316_v29, %v1320_v11  ;;  %v1340_v51 = vor.u32 %v1338_v34, %v1336_v45  ;;  %v355_v43 = vrot.slane %v3903_v46, 1 }
  0x38   : > { %3216 = vmatprep.mubr.msk.bf16.mxu1 %vm361_vm2, %v338_v44  ;;  %v1324_v44 = vor.u32 %v1322_v3, %v1320_v11  ;;  %v350_v63 = vsel %vm319_vm1, %v347_v60, %v349_v16  ;;  %v1350_v1 = vshll.u32 %v3572_v48, 16  ;;  %v1358_v58 = vshll.u32 %v3573_v42, 16  ;;  %v3576_v3 = vld [vmem:[%s3761_s9 + $0x98] sm:$0xff]  }
  0x39   : > { %v3921_v61 = vsel %vm319_vm1, %v349_v16, %v351_v24  ;;  %v357_v11 = vrot.slane %v3912_v62, 1  ;;  %v3931_v60 = vsel %vm1213_vm3, %v1332_v50, %v1336_v45  ;;  %v3934_v13 = vsel %vm1213_vm3, %v1340_v51, %v1344_v52 }
  0x3a   : > { %v1352_v16 = vrot.slane %v1350_v1, 1  ;;  %v1360_v19 = vrot.slane %v1358_v58, 1  ;;  %v1362_v22 = vshrl.u32 %v3573_v42, 16  ;;  %v1366_v23 = vshll.u32 %v3576_v3, 16 }
  0x3b   : > { %v3938_v26 = vsel %vm319_vm1, %v353_v38, %v355_v43  ;;  %v1370_v29 = vshrl.u32 %v3576_v3, 16  ;;  %v629_v30 = vrot.slane %v627_v33, 2  ;;  %v3946_v34 = vsel %vm319_vm1, %v355_v43, %v357_v11 }
  0x3c   : > { %3297 = vmatmul.mubr.msk.bf16.gmra.mrb[12].mxu0 %vm361_vm2, %v1281_v2  ;;  %v1354_v2 = vshrl.u32 %v3572_v48, 16  ;;  %v632_v37 = vshrl.u32 %v3767_v7, 16  ;;  %v641_v50 = vshrl.u32 %v3770_v8, 16  ;;  %v650_v42 = vshrl.u32 %v3784_v21, 16 }
  0x3d   : > { %3300 = vmatprep.mubr.msk.bf16.mxu0 %vm361_vm2, %v1289_v9  ;;  %v3924_v9 = vsel %vm319_vm1, %v351_v24, %v353_v38  ;;  %v630_v33 = vor.u32 %v629_v30, %v3829_v10  ;;  %v659_v43 = vshrl.u32 %v3789_v27, 16  ;;  %v662_v10 = vshll.u32 %v3789_v27, 16 }
  0x3e   : > { %v1356_v24 = vor.u32 %v1354_v2, %v1352_v16  ;;  %v634_v45 = vrot.slane %v632_v37, 1  ;;  %v643_v51 = vrot.slane %v641_v50, 1  ;;  %v704_v50 = vshrl.u32 %v3834_v15, 16 }
  0x3f   : > { %3217 = vmatmul.mubr.msk.bf16.gmra.mrb[16].mxu1 %vm361_vm2, %v340_v5  ;;  %v3918_v5 = vsel %vm1213_vm3, %v1324_v44, %v1328_v20  ;;  %v359_v20 = vrot.slane %v3575_v12, 1  ;;  %v635_v44 = vshll.u32 %v3767_v7, 16  ;;  %v653_v7 = vshll.u32 %v3784_v21, 16 }
  0x40   : > { %3220 = vmatprep.mubr.msk.bf16.mxu1 %vm361_vm2, %v342_v14  ;;  %v1348_v14 = vor.u32 %v1346_v55, %v1344_v52  ;;  %v3958_v6 = vsel %vm1213_vm3, %v1356_v24, %v1360_v19  ;;  %v644_v55 = vshll.u32 %v3770_v8, 16  ;;  %v652_v8 = vrot.slane %v650_v42, 1 }
  0x41   : > { %v3953_v38 = vsel %vm319_vm1, %v357_v11, %v359_v20  ;;  %v637_v48 = vrot.slane %v635_v44, 2  ;;  %v655_v3 = vrot.slane %v653_v7, 2  ;;  %v664_v11 = vrot.slane %v662_v10, 2 }
  0x42   : > { %v646_v58 = vrot.slane %v644_v55, 2  ;;  %v668_v21 = vshrl.u32 %v3799_v41, 16  ;;  %v680_v20 = vshll.u32 %v3805_v47, 16  ;;  %v686_v24 = vshrl.u32 %v3817_v59, 16 }
  0x43   : > { %v638_v2 = vor.u32 %v637_v48, %v634_v45  ;;  %v698_v44 = vshll.u32 %v3822_v0, 16  ;;  %v707_v48 = vshll.u32 %v3834_v15, 16  ;;  %v713_v42 = vshrl.u32 %v3838_v17, 16 }
  0x44   : > { %3301 = vmatmul.mubr.msk.bf16.gmra.mrb[16].mxu0 %vm361_vm2, %v1297_v35  ;;  %v1364_v35 = vor.u32 %v1362_v22, %v1360_v19  ;;  %v647_v27 = vor.u32 %v646_v58, %v643_v51  ;;  %v670_v19 = vrot.slane %v668_v21, 1  ;;  %v688_v37 = vrot.slane %v686_v24, 1 }
  0x45   : > { %3304 = vmatprep.mubr.msk.bf16.mxu0 %vm361_vm2, %v1305_v39  ;;  %v3950_v39 = vsel %vm1213_vm3, %v1348_v14, %v1352_v16  ;;  %v3978_v12 = vsel %vm622_vm4, %v630_v33, %v638_v2  ;;  %v656_v14 = vor.u32 %v655_v3, %v652_v8  ;;  %v706_v51 = vrot.slane %v704_v50, 1 }
  0x46   : > { %v709_v7 = vrot.slane %v707_v48, 2  ;;  %v722_v10 = vshrl.u32 %v3848_v31, 16  ;;  %v725_v8 = vshll.u32 %v3848_v31, 16  ;;  %v734_v21 = vshll.u32 %v3851_v32, 16 }
  0x47   : > { %3221 = vmatmul.mubr.msk.bf16.gmra.mrb[20].mxu1 %vm361_vm2, %v344_v36  ;;  %v1368_v36 = vrot.slane %v1366_v23, 1  ;;  %v743_v31 = vshll.u32 %v3866_v53, 16  ;;  %v779_v50 = vshll.u32 %v3894_v28, 16 }
  0x48   : > { %3224 = vmatprep.mubr.msk.bf16.mxu1 %vm361_vm2, %v346_v40  ;;  %v1374_v40 = vshll.u32 %v3941_v25, 16  ;;  %v710_v58 = vor.u32 %v709_v7, %v706_v51 }
  0x49   : > { %v3963_v52 = vsel %vm1213_vm3, %v1364_v35, %v1368_v36  ;;  %v3973_v1 = vor.u32 %v1370_v29, %v1368_v36  ;;  %v3988_v29 = vsel %vm622_vm4, %v647_v27, %v656_v14  ;;  %v689_v35 = vshll.u32 %v3817_v59, 16 }
  0x4b   : > { %v691_v45 = vrot.slane %v689_v35, 2 }
  0x4c   : > { %3305 = vmatmul.mubr.msk.bf16.gmra.mrb[20].mxu0 %vm361_vm2, %v1313_v56  ;;  %v661_v56 = vrot.slane %v659_v43, 1  ;;  %v715_v43 = vrot.slane %v713_v42, 1 }
  0x4d   : > { %3308 = vmatprep.mubr.msk.bf16.mxu0 %vm361_vm2, %v1321_v57  ;;  %v677_v57 = vshrl.u32 %v3805_v47, 16  ;;  %v695_v47 = vshrl.u32 %v3822_v0, 16  ;;  %v700_v0 = vrot.slane %v698_v44, 2  ;;  %v692_v15 = vor.u32 %v691_v45, %v688_v37 }
  0x4e   : > { %v665_v16 = vor.u32 %v664_v11, %v661_v56  ;;  %v724_v11 = vrot.slane %v722_v10, 1  ;;  %v761_v37 = vshll.u32 %v3878_v4, 16  ;;  %v770_v44 = vshll.u32 %v3885_v18, 16 }
  0x4f   : > { %3225 = vmatmul.mubr.msk.bf16.gmra.mrb[24].mxu1 %vm361_vm2, %v348_v49  ;;  %v671_v49 = vshll.u32 %v3799_v41, 16  ;;  %v679_v23 = vrot.slane %v677_v57, 1  ;;  %v682_v41 = vrot.slane %v680_v20, 2  ;;  %v697_v55 = vrot.slane %v695_v47, 1 }
  0x50   : > { %3228 = vmatprep.mubr.msk.bf16.mxu1 %vm361_vm2, %v350_v63  ;;  %v3984_v63 = vsel %vm622_vm4, %v638_v2, %v647_v27  ;;  %v3991_v30 = vsel %vm622_vm4, %v656_v14, %v665_v16  ;;  %v740_v57 = vshrl.u32 %v3866_v53, 16  ;;  %v767_v47 = vshrl.u32 %v3885_v18, 16 }
  0x51   : > { %v673_v22 = vrot.slane %v671_v49, 2  ;;  %v683_v33 = vor.u32 %v682_v41, %v679_v23  ;;  %v758_v23 = vshrl.u32 %v3878_v4, 16  ;;  %v745_v41 = vrot.slane %v743_v31, 2 }
  0x52   : > { %v763_v45 = vrot.slane %v761_v37, 2  ;;  %v772_v4 = vrot.slane %v770_v44, 2  ;;  %v781_v18 = vrot.slane %v779_v50, 2  ;;  %v1376_v10 = vrot.slane %v1374_v40, 1 }
  0x53   : > { %v674_v36 = vor.u32 %v673_v22, %v670_v19  ;;  %v4016_v2 = vsel %vm622_vm4, %v683_v33, %v692_v15  ;;  %v749_v19 = vshrl.u32 %v3869_v54, 16  ;;  %v742_v22 = vrot.slane %v740_v57, 1  ;;  %v3578_v57 = vld [vmem:[%s3761_s9] sm:$0xff]  }
  0x54   : > { %3309 = vmatmul.mubr.msk.bf16.gmra.mrb[24].mxu0 %vm361_vm2, %v3918_v5 }
  0x55   : > { %3312 = vmatprep.mubr.msk.bf16.mxu0 %vm361_vm2, %v3931_v60  ;;  %v4005_v59 = vsel %vm622_vm4, %v665_v16, %v674_v36  ;;  %v4011_v5 = vsel %vm622_vm4, %v674_v36, %v683_v33  ;;  %v716_v60 = vshll.u32 %v3838_v17, 16  ;;  %v727_v17 = vrot.slane %v725_v8, 2 }
  0x56   : > { %v736_v16 = vrot.slane %v734_v21, 2  ;;  %v751_v35 = vrot.slane %v749_v19, 1  ;;  %v760_v36 = vrot.slane %v758_v23, 1  ;;  %v3580_v19 = vld [vmem:[%s3761_s9 + $0x10] sm:$0xff]  }
  0x57   : > { %3229 = vmatmul.mubr.msk.bf16.gmra.mrb[28].mxu1 %vm361_vm2, %v3921_v61  ;;  %v701_v61 = vor.u32 %v700_v0, %v697_v55  ;;  %v718_v56 = vrot.slane %v716_v60, 2  ;;  %v728_v20 = vor.u32 %v727_v17, %v724_v11  ;;  %v769_v55 = vrot.slane %v767_v47, 1  ;;  %v3592_v23 = vld [vmem:[%s3761_s9 + $0x70] sm:$0xff]  }
  0x58   : > { %3232 = vmatprep.mubr.msk.bf16.mxu1 %vm361_vm2, %v3924_v9  ;;  %v731_v9 = vshrl.u32 %v3851_v32, 16  ;;  %v752_v32 = vshll.u32 %v3869_v54, 16  ;;  %v785_v0 = vshrl.u32 %v3903_v46, 16  ;;  %v794_v60 = vshrl.u32 %v3912_v62, 16 }
  0x59   : > { %v4021_v3 = vsel %vm622_vm4, %v692_v15, %v701_v61  ;;  %v4025_v27 = vsel %vm622_vm4, %v701_v61, %v710_v58  ;;  %v719_v14 = vor.u32 %v718_v56, %v715_v43  ;;  %v764_v15 = vor.u32 %v763_v45, %v760_v36 }
  0x5a   : > { %v733_v49 = vrot.slane %v731_v9, 1  ;;  %v754_v54 = vrot.slane %v752_v32, 2  ;;  %v773_v7 = vor.u32 %v772_v4, %v769_v55  ;;  %v787_v61 = vrot.slane %v785_v0, 1  ;;  %v3591_v32 = vld [vmem:[%s3761_s9 + $0x68] sm:$0xff]  }
  0x5b   : > { %v4039_v24 = vsel %vm622_vm4, %v710_v58, %v719_v14  ;;  %v788_v43 = vshll.u32 %v3903_v46, 16  ;;  %v797_v9 = vshll.u32 %v3912_v62, 16  ;;  %v796_v11 = vrot.slane %v794_v60, 1 }
  0x5c   : > { %3313 = vmatmul.mubr.msk.bf16.gmra.mrb[28].mxu0 %vm361_vm2, %v3934_v13  ;;  %v737_v53 = vor.u32 %v736_v16, %v733_v49  ;;  %v4044_v13 = vsel %vm622_vm4, %v719_v14, %v728_v20  ;;  %v755_v33 = vor.u32 %v754_v54, %v751_v35  ;;  %v774_v46 = vsel %vm622_vm4, %v764_v15, %v773_v7  ;;  %v3597_v35 = vld [vmem:[%s3761_s9 + $0x90] sm:$0xff]  }
  0x5d   : > { %3316 = vmatprep.mubr.msk.bf16.mxu0 %vm361_vm2, %v3950_v39  ;;  %v746_v39 = vor.u32 %v745_v41, %v742_v22  ;;  %v790_v56 = vrot.slane %v788_v43, 2  ;;  %v799_v40 = vrot.slane %v797_v9, 2  ;;  %v3590_v22 = vld [vmem:[%s3761_s9 + $0x60] sm:$0xff]   ;;  %v3595_v41 = vld [vmem:[%s3761_s9 + $0x88] sm:$0xff]   ;;  %v2113_v54 = vlaneseq }
  0x5e   : > { %v765_v58 = vsel %vm622_vm4, %v755_v33, %v764_v15 }
  0x5f   : > { %3233 = vmatmul.mubr.msk.bf16.gmra.mrb[32].mxu1 %vm361_vm2, %v3938_v26  ;;  %v4048_v26 = vsel %vm622_vm4, %v728_v20, %v737_v53  ;;  %v4055_v48 = vsel %vm622_vm4, %v737_v53, %v746_v39  ;;  %v4059_v42 = vsel %vm622_vm4, %v746_v39, %v755_v33  ;;  %v791_v21 = vor.u32 %v790_v56, %v787_v61  ;;  %v3582_v20 = vld [vmem:[%s3761_s9 + $0x20] sm:$0xff]  }
  0x60   : > { %3236 = vmatprep.mubr.msk.bf16.mxu1 %vm361_vm2, %v3946_v34  ;;  %v776_v34 = vshrl.u32 %v3894_v28, 16  ;;  %v3596_v28 = vld [vmem:[%s3761_s9 + $0xa8] ss:$0 sps:$4 sm:$0x33]   ;;  %v3594_v53 = vld [vmem:[%s3761_s9 + $0x80] sm:$0xff]   ;;  %v2114_v36 = vshrl.u32 %v2113_v54, 7 }
  0x61   : > { %v806_v62 = vshll.u32 %v3596_v28, 16  ;;  %v4161_v33 = vld [vmem:[%s4716_s2] sm:$0x1] }
  0x62   : > { %v778_v51 = vrot.slane %v776_v34, 1  ;;  %v4156_v44 = vsub.s32 0, %v2114_v36 }
  0x63   : > { %v808_v49 = vrot.slane %v806_v62, 2 }
  0x64   : > { %3317 = vmatmul.mubr.msk.bf16.gmra.mrb[32].mxu0 %vm361_vm2, %v3958_v6  ;;  %v782_v8 = vor.u32 %v781_v18, %v778_v51  ;;  %v803_v6 = vshrl.u32 %v3596_v28, 16  ;;  %v4165_v34 = vrot.slane %v4161_v33, %v4156_v44 }
  0x65   : > { %3320 = vmatprep.mubr.msk.bf16.mxu0 %vm361_vm2, %v3963_v52  ;;  %v1377_v52 = vsel %vm1213_vm3, %v3973_v1, %v1376_v10  ;;  %v3579_v1 = vld [vmem:[%s3761_s9 + $0x8] sm:$0xff]  }
  0x66   : > { %v783_v25 = vsel %vm622_vm4, %v773_v7, %v782_v8  ;;  %v805_v17 = vrot.slane %v803_v6, 1  ;;  %v792_v14 = vsel %vm622_vm4, %v782_v8, %v791_v21 }
  0x67   : > { %3237 = vmatmul.mubr.msk.bf16.gmra.mrb[36].mxu1 %vm361_vm2, %v3953_v38  ;;  %v800_v38 = vor.u32 %v799_v40, %v796_v11 }
  0x68   : > { %3242 = vmatprep.mubr.msk.bf16.mxu1 %vm361_vm2, %v3978_v12  ;;  %v809_v16 = vor.u32 %v808_v49, %v805_v17 }
  0x69   : > { %v801_v12 = vsel %vm622_vm4, %v791_v21, %v800_v38 }
  0x6a   : > { %v810_v31 = vsel %vm622_vm4, %v800_v38, %v809_v16 }
  0x6c   : > { %3321 = vmatmul.mubr.msk.bf16.gmra.mrb[36].mxu0 %vm361_vm2, %v1377_v52 }
  0x6d   : > { %3326 = vmatprep.mubr.msk.bf16.mxu0 %vm361_vm2, %v3578_v57 }
  0x6f   : > { %3243 = vmatmul.mubr.msk.bf16.vlgmr.msra.gmra.mrb[0].mxu1 %vm361_vm2, %v3984_v63  ;;  %v3581_v63 = vld [vmem:[%s3761_s9 + $0x18] sm:$0xff]  }
  0x70   : > { %3246 = vmatprep.mubr.msk.bf16.mxu1 %vm361_vm2, %v3988_v29  ;;  %v3583_v29 = vld [vmem:[%s3761_s9 + $0x28] sm:$0xff]  }
  0x74   : > { %3327 = vmatmul.mubr.msk.bf16.vlgmr.msra.gmra.mrb[0].mxu0 %vm361_vm2, %v3579_v1 }
  0x75   : > { %3330 = vmatprep.mubr.msk.bf16.mxu0 %vm361_vm2, %v3580_v19 }
  0x77   : > { %3247 = vmatmul.mubr.msk.bf16.gmra.mrb[4].mxu1 %vm361_vm2, %v3991_v30  ;;  %v3584_v30 = vld [vmem:[%s3761_s9 + $0x30] sm:$0xff]  }
  0x78   : > { %3250 = vmatprep.mubr.msk.bf16.mxu1 %vm361_vm2, %v4005_v59  ;;  %v3585_v59 = vld [vmem:[%s3761_s9 + $0x38] sm:$0xff]  }
  0x7c   : > { %3331 = vmatmul.mubr.msk.bf16.gmra.mrb[4].mxu0 %vm361_vm2, %v3581_v63 }
  0x7d   : > { %3334 = vmatprep.mubr.msk.bf16.mxu0 %vm361_vm2, %v3582_v20 }
  0x7f   : > { %3251 = vmatmul.mubr.msk.bf16.gmra.mrb[8].mxu1 %vm361_vm2, %v4011_v5  ;;  %v3586_v5 = vld [vmem:[%s3761_s9 + $0x40] sm:$0xff]  }
  0x80   : > { %3254 = vmatprep.mubr.msk.bf16.mxu1 %vm361_vm2, %v4016_v2  ;;  %v3587_v2 = vld [vmem:[%s3761_s9 + $0x48] sm:$0xff]  }
  0x84   : > { %3335 = vmatmul.mubr.msk.bf16.gmra.mrb[8].mxu0 %vm361_vm2, %v3583_v29 }
  0x85   : > { %3338 = vmatprep.mubr.msk.bf16.mxu0 %vm361_vm2, %v3584_v30 }
  0x87   : > { %3255 = vmatmul.mubr.msk.bf16.gmra.mrb[12].mxu1 %vm361_vm2, %v4021_v3  ;;  %v3588_v3 = vld [vmem:[%s3761_s9 + $0x50] sm:$0xff]  }
  0x88   : > { %3258 = vmatprep.mubr.msk.bf16.mxu1 %vm361_vm2, %v4025_v27  ;;  %v3589_v27 = vld [vmem:[%s3761_s9 + $0x58] sm:$0xff]  }
  0x8c   : > { %3339 = vmatmul.mubr.msk.bf16.gmra.mrb[12].mxu0 %vm361_vm2, %v3585_v59 }
  0x8d   : > { %3342 = vmatprep.mubr.msk.bf16.mxu0 %vm361_vm2, %v3586_v5 }
  0x8f   : > { %3259 = vmatmul.mubr.msk.bf16.gmra.mrb[16].mxu1 %vm361_vm2, %v4039_v24  ;;  %v3593_v24 = vld [vmem:[%s3761_s9 + $0x78] sm:$0xff]  }
  0x90   : > { %3262 = vmatprep.mubr.msk.bf16.mxu1 %vm361_vm2, %v4044_v13  ;;  %v3598_v13 = vld [vmem:[%s3761_s9 + $0x98] sm:$0xff]  }
  0x94   : > { %3343 = vmatmul.mubr.msk.bf16.gmra.mrb[16].mxu0 %vm361_vm2, %v3587_v2 }
  0x95   : > { %3346 = vmatprep.mubr.msk.bf16.mxu0 %vm361_vm2, %v3588_v3 }
  0x97   : > { %3263 = vmatmul.mubr.msk.bf16.gmra.mrb[20].mxu1 %vm361_vm2, %v4048_v26 }
  0x98   : > { %3266 = vmatprep.mubr.msk.bf16.mxu1 %vm361_vm2, %v4055_v48 }
  0x9c   : > { %3347 = vmatmul.mubr.msk.bf16.gmra.mrb[20].mxu0 %vm361_vm2, %v3589_v27 }
  0x9d   : > { %3350 = vmatprep.mubr.msk.bf16.mxu0 %vm361_vm2, %v3590_v22 }
  0x9f   : > { %3267 = vmatmul.mubr.msk.bf16.gmra.mrb[24].mxu1 %vm361_vm2, %v4059_v42 }
  0xa0   : > { %3270 = vmatprep.mubr.msk.bf16.mxu1 %vm361_vm2, %v765_v58 }
  0xa4   : > { %3351 = vmatmul.mubr.msk.bf16.gmra.mrb[24].mxu0 %vm361_vm2, %v3591_v32 }
  0xa5   : > { %3354 = vmatprep.mubr.msk.bf16.mxu0 %vm361_vm2, %v3592_v23 }
  0xa7   : > { %3271 = vmatmul.mubr.msk.bf16.gmra.mrb[28].mxu1 %vm361_vm2, %v774_v46 }
  0xa8   : > { %3274 = vmatprep.mubr.msk.bf16.mxu1 %vm361_vm2, %v783_v25 }
  0xac   : > { %3355 = vmatmul.mubr.msk.bf16.gmra.mrb[28].mxu0 %vm361_vm2, %v3593_v24 }
  0xad   : > { %3358 = vmatprep.mubr.msk.bf16.mxu0 %vm361_vm2, %v3594_v53 }
  0xaf   : > { %3275 = vmatmul.mubr.msk.bf16.gmra.mrb[32].mxu1 %vm361_vm2, %v792_v14 }
  0xb0   : > { %3278 = vmatprep.mubr.msk.bf16.mxu1 %vm361_vm2, %v801_v12 }
  0xb4   : > { %3359 = vmatmul.mubr.msk.bf16.gmra.mrb[32].mxu0 %vm361_vm2, %v3595_v41 }
  0xb5   : > { %3362 = vmatprep.mubr.msk.bf16.mxu0 %vm361_vm2, %v3597_v35 }
  0xb7   : > { %3279 = vmatmul.mubr.msk.bf16.gmra.mrb[36].mxu1 %vm361_vm2, %v810_v31 }
  0xbc   : > { %3363 = vmatmul.mubr.msk.bf16.gmra.mrb[36].mxu0 %vm361_vm2, %v3598_v13 }
 0x142   : > { %v3244_v37 = vpop.f32.mrb[0].mxu1 }
 0x143   : > { %v908_v26 = vpop.f32.mrb[1].mxu1 }
 0x144   : > { %v3245_v39 = vpop.f32.mrb[2].mxu1 }
 0x145   : > { %v911_v47 = vpop.f32.mrb[3].mxu1 }
 0x147   : > { %v3328_v45 = vpop.f32.mrb[0].mxu0 }
 0x148   : > { %v3366_v50 = vadd.f32 %v3328_v45, %v3244_v37  ;;  %v1913_v48 = vpop.f32.mrb[1].mxu0 }
 0x149   : > { %v3367_v4 = vadd.f32 %v1913_v48, %v908_v26  ;;  %v3329_v0 = vpop.f32.mrb[2].mxu0 }
 0x14a   : > { %v3248_v55 = vpop.f32.mrb[4].mxu1  ;;  %v3368_v15 = vadd.f32 %v3329_v0, %v3245_v39  ;;  %v1916_v51 = vpop.f32.mrb[3].mxu0  ;;  %v4171_v60 = vadd.f32 %v3366_v50, %v4165_v34 }
 0x14b   : > { %v924_v42 = vpop.f32.mrb[5].mxu1  ;;  %v4168_v7 = vadd.f32 %v3367_v4, %v4165_v34  ;;  %v3369_v61 = vadd.f32 %v1916_v51, %v911_v47 }
 0x14c   : > { %v3249_v18 = vpop.f32.mrb[6].mxu1  ;;  %v4177_v10 = vadd.f32 %v3368_v15, %v4165_v34  ;;  %v2206_v25 = vmul.f32 %v4171_v60, %v4171_v60 }
 0x14d   : > { %v927_v43 = vpop.f32.mrb[7].mxu1  ;;  %v4174_v28 = vadd.f32 %v3369_v61, %v4165_v34  ;;  %v2204_v58 = vmul.f32 %v4168_v7, %v4168_v7 }
 0x14e   : > { %v2207_v49 = vmul.f32 %v4177_v10, %v4177_v10 }
 0x14f   : > { %v2158_v8 = vadd.f32 %v4174_v28, %v4168_v7  ;;  %v2205_v9 = vmul.f32 %v4174_v28, %v4174_v28  ;;  %v3332_v46 = vpop.f32.mrb[4].mxu0 }
 0x150   : > { %v3370_v56 = vadd.f32 %v3332_v46, %v3248_v55  ;;  %v1929_v11 = vpop.f32.mrb[5].mxu0 }
 0x151   : > { %v2159_v40 = vadd.f32 %v2158_v8, %v4171_v60  ;;  %v2244_v62 = vadd.f32 %v2205_v9, %v2204_v58  ;;  %v3371_v21 = vadd.f32 %v1929_v11, %v924_v42  ;;  %v3333_v17 = vpop.f32.mrb[6].mxu0 }
 0x152   : > { %v3252_v6 = vpop.f32.mrb[8].mxu1  ;;  %v3372_v52 = vadd.f32 %v3333_v17, %v3249_v18  ;;  %v1932_v57 = vpop.f32.mrb[7].mxu0  ;;  %v4195_v63 = vadd.f32 %v3370_v56, %v4165_v34 }
 0x153   : > { %v940_v38 = vpop.f32.mrb[9].mxu1  ;;  %v2245_v12 = vadd.f32 %v2244_v62, %v2206_v25  ;;  %v4191_v16 = vadd.f32 %v3371_v21, %v4165_v34  ;;  %v2160_v31 = vadd.f32 %v2159_v40, %v4177_v10  ;;  %v3373_v1 = vadd.f32 %v1932_v57, %v927_v43 }
 0x154   : > { %v3253_v14 = vpop.f32.mrb[10].mxu1  ;;  %v4204_v5 = vadd.f32 %v3372_v52, %v4165_v34  ;;  %v2210_v53 = vmul.f32 %v4195_v63, %v4195_v63 }
 0x155   : > { %v943_v19 = vpop.f32.mrb[11].mxu1  ;;  %v2161_v20 = vadd.f32 %v2160_v31, %v4191_v16  ;;  %v2208_v29 = vmul.f32 %v4191_v16, %v4191_v16  ;;  %v2246_v30 = vadd.f32 %v2245_v12, %v2207_v49  ;;  %v4201_v59 = vadd.f32 %v3373_v1, %v4165_v34 }
 0x156   : > { %v2211_v37 = vmul.f32 %v4204_v5, %v4204_v5 }
 0x157   : > { %v2247_v2 = vadd.f32 %v2246_v30, %v2208_v29  ;;  %v2162_v3 = vadd.f32 %v2161_v20, %v4201_v59  ;;  %v2209_v27 = vmul.f32 %v4201_v59, %v4201_v59  ;;  %v3336_v22 = vpop.f32.mrb[8].mxu0 }
 0x158   : > { %v3374_v32 = vadd.f32 %v3336_v22, %v3252_v6  ;;  %v1945_v23 = vpop.f32.mrb[9].mxu0 }
 0x159   : > { %v2163_v41 = vadd.f32 %v2162_v3, %v4195_v63  ;;  %v2248_v35 = vadd.f32 %v2247_v2, %v2209_v27  ;;  %v3375_v13 = vadd.f32 %v1945_v23, %v940_v38  ;;  %v3337_v54 = vpop.f32.mrb[10].mxu0 }
 0x15a   : > { %v3256_v24 = vpop.f32.mrb[12].mxu1  ;;  %v3376_v26 = vadd.f32 %v3337_v54, %v3253_v14  ;;  %v1948_v39 = vpop.f32.mrb[11].mxu0  ;;  %v4219_v0 = vadd.f32 %v3374_v32, %v4165_v34 }
 0x15b   : > { %v956_v36 = vpop.f32.mrb[13].mxu1  ;;  %v2249_v45 = vadd.f32 %v2248_v35, %v2210_v53  ;;  %v4215_v50 = vadd.f32 %v3375_v13, %v4165_v34  ;;  %v2164_v48 = vadd.f32 %v2163_v41, %v4204_v5  ;;  %v3377_v55 = vadd.f32 %v1948_v39, %v943_v19 }
 0x15c   : > { %v3257_v47 = vpop.f32.mrb[14].mxu1  ;;  %v4228_v61 = vadd.f32 %v3376_v26, %v4165_v34  ;;  %v2214_v6 = vmul.f32 %v4219_v0, %v4219_v0 }
 0x15d   : > { %v959_v4 = vpop.f32.mrb[15].mxu1  ;;  %v2165_v42 = vadd.f32 %v2164_v48, %v4215_v50  ;;  %v2212_v15 = vmul.f32 %v4215_v50, %v4215_v50  ;;  %v2250_v51 = vadd.f32 %v2249_v45, %v2211_v37  ;;  %v4225_v18 = vadd.f32 %v3377_v55, %v4165_v34 }
 0x15e   : > { %v2215_v38 = vmul.f32 %v4228_v61, %v4228_v61 }
 0x15f   : > { %v2251_v43 = vadd.f32 %v2250_v51, %v2212_v15  ;;  %v2166_v58 = vadd.f32 %v2165_v42, %v4225_v18  ;;  %v2213_v8 = vmul.f32 %v4225_v18, %v4225_v18  ;;  %v3340_v9 = vpop.f32.mrb[12].mxu0 }
 0x160   : > { %v3378_v46 = vadd.f32 %v3340_v9, %v3256_v24  ;;  %v1961_v56 = vpop.f32.mrb[13].mxu0 }
 0x161   : > { %v2167_v25 = vadd.f32 %v2166_v58, %v4219_v0  ;;  %v2252_v40 = vadd.f32 %v2251_v43, %v2213_v8  ;;  %v3379_v62 = vadd.f32 %v1961_v56, %v956_v36  ;;  %v3341_v21 = vpop.f32.mrb[14].mxu0 }
 0x162   : > { %v3260_v11 = vpop.f32.mrb[16].mxu1  ;;  %v3380_v49 = vadd.f32 %v3341_v21, %v3257_v47  ;;  %v1964_v52 = vpop.f32.mrb[15].mxu0  ;;  %v4243_v20 = vadd.f32 %v3378_v46, %v4165_v34 }
 0x163   : > { %v972_v17 = vpop.f32.mrb[17].mxu1  ;;  %v2253_v14 = vadd.f32 %v2252_v40, %v2214_v6  ;;  %v4239_v12 = vadd.f32 %v3379_v62, %v4165_v34  ;;  %v2168_v31 = vadd.f32 %v2167_v25, %v4228_v61  ;;  %v3381_v1 = vadd.f32 %v1964_v52, %v959_v4 }
 0x164   : > { %v3261_v57 = vpop.f32.mrb[18].mxu1  ;;  %v4252_v27 = vadd.f32 %v3380_v49, %v4165_v34  ;;  %v2218_v13 = vmul.f32 %v4243_v20, %v4243_v20 }
 0x165   : > { %v975_v19 = vpop.f32.mrb[19].mxu1  ;;  %v2169_v29 = vadd.f32 %v2168_v31, %v4239_v12  ;;  %v2216_v30 = vmul.f32 %v4239_v12, %v4239_v12  ;;  %v2254_v2 = vadd.f32 %v2253_v14, %v2215_v38  ;;  %v4249_v3 = vadd.f32 %v3381_v1, %v4165_v34 }
 0x166   : > { %v2219_v47 = vmul.f32 %v4252_v27, %v4252_v27 }
 0x167   : > { %v2255_v22 = vadd.f32 %v2254_v2, %v2216_v30  ;;  %v2170_v32 = vadd.f32 %v2169_v29, %v4249_v3  ;;  %v2217_v23 = vmul.f32 %v4249_v3, %v4249_v3  ;;  %v3344_v24 = vpop.f32.mrb[16].mxu0 }
 0x168   : > { %v3382_v53 = vadd.f32 %v3344_v24, %v3260_v11  ;;  %v1977_v41 = vpop.f32.mrb[17].mxu0 }
 0x169   : > { %v2171_v54 = vadd.f32 %v2170_v32, %v4243_v20  ;;  %v2256_v36 = vadd.f32 %v2255_v22, %v2217_v23  ;;  %v3383_v37 = vadd.f32 %v1977_v41, %v972_v17  ;;  %v3345_v26 = vpop.f32.mrb[18].mxu0 }
 0x16a   : > { %v3264_v35 = vpop.f32.mrb[20].mxu1  ;;  %v3384_v45 = vadd.f32 %v3345_v26, %v3261_v57  ;;  %v1980_v48 = vpop.f32.mrb[19].mxu0  ;;  %v4267_v58 = vadd.f32 %v3382_v53, %v4165_v34 }
 0x16b   : > { %v988_v39 = vpop.f32.mrb[21].mxu1  ;;  %v2257_v4 = vadd.f32 %v2256_v36, %v2218_v13  ;;  %v4263_v42 = vadd.f32 %v3383_v37, %v4165_v34  ;;  %v2172_v15 = vadd.f32 %v2171_v54, %v4252_v27  ;;  %v3385_v51 = vadd.f32 %v1980_v48, %v975_v19 }
 0x16c   : > { %v3265_v55 = vpop.f32.mrb[22].mxu1  ;;  %v4276_v11 = vadd.f32 %v3384_v45, %v4165_v34  ;;  %v2222_v49 = vmul.f32 %v4267_v58, %v4267_v58 }
 0x16d   : > { %v991_v43 = vpop.f32.mrb[23].mxu1  ;;  %v2173_v8 = vadd.f32 %v2172_v15, %v4263_v42  ;;  %v2220_v9 = vmul.f32 %v4263_v42, %v4263_v42  ;;  %v2258_v46 = vadd.f32 %v2257_v4, %v2219_v47  ;;  %v4273_v56 = vadd.f32 %v3385_v51, %v4165_v34 }
 0x16e   : > { %v2223_v19 = vmul.f32 %v4276_v11, %v4276_v11 }
 0x16f   : > { %v2259_v6 = vadd.f32 %v2258_v46, %v2220_v9  ;;  %v2174_v25 = vadd.f32 %v2173_v8, %v4273_v56  ;;  %v2221_v40 = vmul.f32 %v4273_v56, %v4273_v56  ;;  %v3348_v62 = vpop.f32.mrb[20].mxu0 }
 0x170   : > { %v3386_v21 = vadd.f32 %v3348_v62, %v3264_v35  ;;  %v1993_v17 = vpop.f32.mrb[21].mxu0 }
 0x171   : > { %v2175_v52 = vadd.f32 %v2174_v25, %v4267_v58  ;;  %v2260_v57 = vadd.f32 %v2259_v6, %v2221_v40  ;;  %v3387_v14 = vadd.f32 %v1993_v17, %v988_v39  ;;  %v3349_v31 = vpop.f32.mrb[22].mxu0 }
 0x172   : > { %v3268_v38 = vpop.f32.mrb[24].mxu1  ;;  %v3388_v29 = vadd.f32 %v3349_v31, %v3265_v55  ;;  %v1996_v30 = vpop.f32.mrb[23].mxu0  ;;  %v4291_v41 = vadd.f32 %v3386_v21, %v4165_v34 }
 0x173   : > { %v1004_v1 = vpop.f32.mrb[25].mxu1  ;;  %v2261_v22 = vadd.f32 %v2260_v57, %v2222_v49  ;;  %v4287_v32 = vadd.f32 %v3387_v14, %v4165_v34  ;;  %v2176_v23 = vadd.f32 %v2175_v52, %v4276_v11  ;;  %v3389_v24 = vadd.f32 %v1996_v30, %v991_v43 }
 0x174   : > { %v3269_v2 = vpop.f32.mrb[26].mxu1  ;;  %v4300_v37 = vadd.f32 %v3388_v29, %v4165_v34  ;;  %v2226_v15 = vmul.f32 %v4291_v41, %v4291_v41 }
 0x175   : > { %v1007_v53 = vpop.f32.mrb[27].mxu1  ;;  %v2177_v35 = vadd.f32 %v2176_v23, %v4287_v32  ;;  %v2224_v13 = vmul.f32 %v4287_v32, %v4287_v32  ;;  %v2262_v54 = vadd.f32 %v2261_v22, %v2223_v19  ;;  %v4297_v36 = vadd.f32 %v3389_v24, %v4165_v34 }
 0x176   : > { %v2227_v6 = vmul.f32 %v4300_v37, %v4300_v37 }
 0x177   : > { %v2263_v26 = vadd.f32 %v2262_v54, %v2224_v13  ;;  %v2178_v39 = vadd.f32 %v2177_v35, %v4297_v36  ;;  %v2225_v47 = vmul.f32 %v4297_v36, %v4297_v36  ;;  %v3352_v45 = vpop.f32.mrb[24].mxu0 }
 0x178   : > { %v3390_v48 = vadd.f32 %v3352_v45, %v3268_v38  ;;  %v2009_v55 = vpop.f32.mrb[25].mxu0 }
 0x179   : > { %v2179_v51 = vadd.f32 %v2178_v39, %v4291_v41  ;;  %v2264_v43 = vadd.f32 %v2263_v26, %v2225_v47  ;;  %v3391_v8 = vadd.f32 %v2009_v55, %v1004_v1  ;;  %v3353_v9 = vpop.f32.mrb[26].mxu0 }
 0x17a   : > { %v3272_v4 = vpop.f32.mrb[28].mxu1  ;;  %v3392_v25 = vadd.f32 %v3353_v9, %v3269_v2  ;;  %v2012_v40 = vpop.f32.mrb[27].mxu0  ;;  %v4315_v57 = vadd.f32 %v3390_v48, %v4165_v34 }
 0x17b   : > { %v1020_v46 = vpop.f32.mrb[29].mxu1  ;;  %v2265_v21 = vadd.f32 %v2264_v43, %v2226_v15  ;;  %v4311_v17 = vadd.f32 %v3391_v8, %v4165_v34  ;;  %v2180_v38 = vadd.f32 %v2179_v51, %v4300_v37  ;;  %v3393_v49 = vadd.f32 %v2012_v40, %v1007_v53 }
 0x17c   : > { %v3273_v62 = vpop.f32.mrb[30].mxu1  ;;  %v4324_v29 = vadd.f32 %v3392_v25, %v4165_v34  ;;  %v2230_v13 = vmul.f32 %v4315_v57, %v4315_v57 }
 0x17d   : > { %v1023_v52 = vpop.f32.mrb[31].mxu1  ;;  %v2181_v14 = vadd.f32 %v2180_v38, %v4311_v17  ;;  %v2228_v31 = vmul.f32 %v4311_v17, %v4311_v17  ;;  %v2266_v1 = vadd.f32 %v2265_v21, %v2227_v6  ;;  %v4321_v19 = vadd.f32 %v3393_v49, %v4165_v34 }
 0x17e   : > { %v2231_v48 = vmul.f32 %v4324_v29, %v4324_v29 }
 0x17f   : > { %v2267_v30 = vadd.f32 %v2266_v1, %v2228_v31  ;;  %v2182_v2 = vadd.f32 %v2181_v14, %v4321_v19  ;;  %v2229_v22 = vmul.f32 %v4321_v19, %v4321_v19  ;;  %v3356_v23 = vpop.f32.mrb[28].mxu0 }
 0x180   : > { %v3394_v24 = vadd.f32 %v3356_v23, %v3272_v4  ;;  %v2025_v53 = vpop.f32.mrb[29].mxu0 }
 0x181   : > { %v2183_v54 = vadd.f32 %v2182_v2, %v4315_v57  ;;  %v2268_v26 = vadd.f32 %v2267_v30, %v2229_v22  ;;  %v3395_v39 = vadd.f32 %v2025_v53, %v1020_v46  ;;  %v3357_v47 = vpop.f32.mrb[30].mxu0 }
 0x182   : > { %v3276_v35 = vpop.f32.mrb[32].mxu1  ;;  %v3396_v55 = vadd.f32 %v3357_v47, %v3273_v62  ;;  %v2028_v15 = vpop.f32.mrb[31].mxu0  ;;  %v4339_v25 = vadd.f32 %v3394_v24, %v4165_v34 }
 0x183   : > { %v1036_v45 = vpop.f32.mrb[33].mxu1  ;;  %v2269_v43 = vadd.f32 %v2268_v26, %v2230_v13  ;;  %v4335_v4 = vadd.f32 %v3395_v39, %v4165_v34  ;;  %v2184_v8 = vadd.f32 %v2183_v54, %v4324_v29  ;;  %v3397_v9 = vadd.f32 %v2028_v15, %v1023_v52 }
 0x184   : > { %v3277_v51 = vpop.f32.mrb[34].mxu1  ;;  %v4348_v38 = vadd.f32 %v3396_v55, %v4165_v34  ;;  %v2234_v22 = vmul.f32 %v4339_v25, %v4339_v25 }
 0x185   : > { %v1039_v6 = vpop.f32.mrb[35].mxu1  ;;  %v2185_v46 = vadd.f32 %v2184_v8, %v4335_v4  ;;  %v2232_v40 = vmul.f32 %v4335_v4, %v4335_v4  ;;  %v2270_v21 = vadd.f32 %v2269_v43, %v2231_v48  ;;  %v4345_v62 = vadd.f32 %v3397_v9, %v4165_v34 }
 0x186   : > { %v2235_v26 = vmul.f32 %v4348_v38, %v4348_v38 }
 0x187   : > { %v2271_v49 = vadd.f32 %v2270_v21, %v2232_v40  ;;  %v2186_v14 = vadd.f32 %v2185_v46, %v4345_v62  ;;  %v2233_v52 = vmul.f32 %v4345_v62, %v4345_v62  ;;  %v3360_v31 = vpop.f32.mrb[32].mxu0 }
 0x188   : > { %v3398_v1 = vadd.f32 %v3360_v31, %v3276_v35  ;;  %v2041_v30 = vpop.f32.mrb[33].mxu0 }
 0x189   : > { %v2187_v23 = vadd.f32 %v2186_v14, %v4339_v25  ;;  %v2272_v24 = vadd.f32 %v2271_v49, %v2233_v52  ;;  %v3399_v53 = vadd.f32 %v2041_v30, %v1036_v45  ;;  %v3361_v13 = vpop.f32.mrb[34].mxu0 }
 0x18a   : > { %v3280_v2 = vpop.f32.mrb[36].mxu1  ;;  %v3400_v39 = vadd.f32 %v3361_v13, %v3277_v51  ;;  %v2044_v47 = vpop.f32.mrb[35].mxu0  ;;  %v4363_v9 = vadd.f32 %v3398_v1, %v4165_v34 }
 0x18b   : > { %v1052_v54 = vpop.f32.mrb[37].mxu1  ;;  %v2273_v55 = vadd.f32 %v2272_v24, %v2234_v22  ;;  %v4359_v35 = vadd.f32 %v3399_v53, %v4165_v34  ;;  %v2188_v15 = vadd.f32 %v2187_v23, %v4348_v38  ;;  %v3401_v43 = vadd.f32 %v2044_v47, %v1039_v6 }
 0x18c   : > { %v3281_v48 = vpop.f32.mrb[38].mxu1  ;;  %v4372_v21 = vadd.f32 %v3400_v39, %v4165_v34  ;;  %v2238_v30 = vmul.f32 %v4363_v9, %v4363_v9 }
 0x18d   : > { %v1055_v8 = vpop.f32.mrb[39].mxu1  ;;  %v2189_v45 = vadd.f32 %v2188_v15, %v4359_v35  ;;  %v2236_v46 = vmul.f32 %v4359_v35, %v4359_v35  ;;  %v2274_v40 = vadd.f32 %v2273_v55, %v2235_v26  ;;  %v4369_v51 = vadd.f32 %v3401_v43, %v4165_v34 }
 0x18e   : > { %v2239_v13 = vmul.f32 %v4372_v21, %v4372_v21 }
 0x18f   : > { %v2275_v49 = vadd.f32 %v2274_v40, %v2236_v46  ;;  %v2190_v14 = vadd.f32 %v2189_v45, %v4369_v51  ;;  %v2237_v6 = vmul.f32 %v4369_v51, %v4369_v51  ;;  %v3364_v52 = vpop.f32.mrb[36].mxu0 }
 0x190   : > { %v3402_v31 = vadd.f32 %v3364_v52, %v3280_v2  ;;  %v2057_v1 = vpop.f32.mrb[37].mxu0 }
 0x191   : > { %v2191_v22 = vadd.f32 %v2190_v14, %v4363_v9  ;;  %v2276_v23 = vadd.f32 %v2275_v49, %v2237_v6  ;;  %v3403_v24 = vadd.f32 %v2057_v1, %v1052_v54  ;;  %v3365_v53 = vpop.f32.mrb[38].mxu0 }
 0x192   : > { %v3404_v26 = vadd.f32 %v3365_v53, %v3281_v48  ;;  %v2060_v39 = vpop.f32.mrb[39].mxu0  ;;  %v4387_v43 = vadd.f32 %v3402_v31, %v4165_v34 }
 0x193   : > { %v2277_v47 = vadd.f32 %v2276_v23, %v2238_v30  ;;  %v4383_v55 = vadd.f32 %v3403_v24, %v4165_v34  ;;  %v2192_v2 = vadd.f32 %v2191_v22, %v4372_v21  ;;  %v3405_v15 = vadd.f32 %v2060_v39, %v1055_v8 }
 0x194   : > { %v4396_v49 = vadd.f32 %v3404_v26, %v4165_v34  ;;  %v2242_v6 = vmul.f32 %v4387_v43, %v4387_v43 }
 0x195   : > { %v2193_v45 = vadd.f32 %v2192_v2, %v4383_v55  ;;  %v2240_v54 = vmul.f32 %v4383_v55, %v4383_v55  ;;  %v2278_v46 = vadd.f32 %v2277_v47, %v2239_v13  ;;  %v4393_v40 = vadd.f32 %v3405_v15, %v4165_v34 }
 0x196   : > { %v2243_v1 = vmul.f32 %v4396_v49, %v4396_v49 }
 0x197   : > { %v2279_v48 = vadd.f32 %v2278_v46, %v2240_v54  ;;  %v2194_v14 = vadd.f32 %v2193_v45, %v4393_v40  ;;  %v2241_v8 = vmul.f32 %v4393_v40, %v4393_v40 }
 0x199   : > { %v2195_v52 = vadd.f32 %v2194_v14, %v4387_v43  ;;  %v2280_v31 = vadd.f32 %v2279_v48, %v2241_v8 }
 0x19b   : > { %v2196_v30 = vadd.f32 %v2195_v52, %v4396_v49  ;;  %v2281_v22 = vadd.f32 %v2280_v31, %v2242_v6  ;;  %v2316_v31 = vmul.f32 191.0, %v4161_v33 }
 0x19d   : > { %v2197_v23 = vrot.slane %v2196_v30, 4  ;;  %v2282_v34 = vadd.f32 %v2281_v22, %v2243_v1 }
 0x19f   : > { %v2198_v24 = vadd.f32 %v2197_v23, %v2196_v30  ;;  %v2283_v53 = vrot.slane %v2282_v34, 4  ;;  %v2318_v30 = vmul.f32 %v4161_v33, %v4161_v33 }
 0x1a1   : > { %v2199_v13 = vrot.slane %v2198_v24, 2  ;;  %v2284_v26 = vadd.f32 %v2283_v53, %v2282_v34  ;;  %v2319_v53 = vmul.f32 191.0, %v2318_v30 }
 0x1a3   : > { %v2200_v39 = vadd.f32 %v2199_v13, %v2198_v24  ;;  %v2285_v47 = vrot.slane %v2284_v26, 2 }
 0x1a5   : > { %v2201_v2 = vrot.slane %v2200_v39, 1  ;;  %v2286_v15 = vadd.f32 %v2285_v47, %v2284_v26 }
 0x1a7   : > { %v2202_v45 = vadd.f32 %v2201_v2, %v2200_v39  ;;  %v2287_v54 = vrot.slane %v2286_v15, 1 }
 0x1a9   : > { %2299 = vrot.lane.b32.xlu1 %v2202_v45, %s3665_s17  ;;  %2291 = vrot.lane.b32.xlu0 %v2202_v45, %s3666_s19  ;;  %v2288_v46 = vadd.f32 %v2287_v54, %v2286_v15 }
 0x1ad   : > { %2304 = vrot.lane.b32.xlu1 %v2288_v46, %s3666_s19  ;;  %2295 = vrot.lane.b32.xlu0 %v2202_v45, %s3667_s20 }
 0x1b1   : > { %2312 = vrot.lane.b32.xlu1 %v2288_v46, %s3665_s17  ;;  %2308 = vrot.lane.b32.xlu0 %v2288_v46, %s3667_s20 }
 0x21b   : > { %v2300_v48 = vpop.permute.xlu1 %2299  ;;  %v2292_v14 = vpop.permute.xlu0 %2291 }
 0x21c   : > { %v2294_v8 = vadd.f32 %v2292_v14, %v2202_v45 }
 0x21f   : > { %v2305_v6 = vpop.permute.xlu1 %2304  ;;  %v2296_v52 = vpop.permute.xlu0 %2295 }
 0x220   : > { %v2298_v1 = vadd.f32 %v2296_v52, %v2294_v8  ;;  %v2307_v22 = vadd.f32 %v2305_v6, %v2288_v46 }
 0x222   : > { %v2302_v23 = vadd.f32 %v2300_v48, %v2298_v1 }
 0x223   : > { %v2309_v34 = vpop.permute.xlu0 %2308  ;;  %v2313_v26 = vpop.permute.xlu1 %2312 }
 0x224   : > { %v2317_v24 = vsub.f32 %v2302_v23, %v2316_v31  ;;  %v2311_v13 = vadd.f32 %v2309_v34, %v2307_v22 }
 0x226   : > { %v2321_v39 = vmul.f32 0.00091827364, %v2317_v24  ;;  %v2315_v47 = vadd.f32 %v2313_v26, %v2311_v13 }
 0x228   : > { %v2320_v2 = vsub.f32 %v2315_v47, %v2319_v53  ;;  %2332 = vrot.lane.b32.xlu1 %v2321_v39, %s3667_s20  ;;  %2329 = vrot.lane.b32.xlu0 %v2321_v39, %s3665_s17  ;;  %v2323_v15 = vmul.f32 %v2321_v39, %v2321_v39 }
 0x22a   : > { %v2322_v45 = vmul.f32 0.00091827364, %v2320_v2 }
 0x22c   : > { %v2324_v54 = vsub.f32 %v2322_v45, %v2323_v15  ;;  %2335 = vrot.lane.b32.xlu0 %v2321_v39, %s3666_s19 }
 0x22e   : > { %v2325_v33 = vmax.f32 %v2324_v54, 0.0 }
 0x230   : > { %v2326_v46 = vadd.f32 1e-05, %v2325_v33 }
 0x232   : > { %3599 = vrsqrt.f32 %v2326_v46 }
 0x23c   : > { %v3600_v48 = vpop.eup %3599 }
 0x23d   : > { %2348 = vrot.lane.b32.xlu0 %v3600_v48, %s3667_s20  ;;  %2345 = vrot.lane.b32.xlu1 %v3600_v48, %s3665_s17 }
 0x241   : > { %2351 = vrot.lane.b32.xlu1 %v3600_v48, %s3666_s19 }
 0x29a   : > { %v2330_v14 = vpop.permute.xlu0 %2329  ;;  %v2333_v8 = vpop.permute.xlu1 %2332 }
 0x29b   : > { %v2339_v6 = vsel %vm2338_vm5, %v2321_v39, %v2330_v14 }
 0x29c   : > { %v2341_v31 = vsel %vm2340_vm6, %v2339_v6, %v2333_v8 }
 0x29e   : > { %v2336_v52 = vpop.permute.xlu0 %2335 }
 0x29f   : > { %v2343_v1 = vsel %vm2342_vm7, %v2341_v31, %v2336_v52 }
 0x2a0   : > { %v4426_v30 = vrot.slane %v2343_v1, %v4156_v44 }
 0x2a2   : > { %v2361_v22 = vsub.f32 %v4168_v7, %v4426_v30  ;;  %v2362_v23 = vsub.f32 %v4174_v28, %v4426_v30  ;;  %v2363_v34 = vsub.f32 %v4171_v60, %v4426_v30  ;;  %v2364_v24 = vsub.f32 %v4177_v10, %v4426_v30 }
 0x2a3   : > { %v2365_v53 = vsub.f32 %v4191_v16, %v4426_v30  ;;  %v2366_v13 = vsub.f32 %v4201_v59, %v4426_v30  ;;  %v2367_v26 = vsub.f32 %v4195_v63, %v4426_v30  ;;  %v2368_v7 = vsub.f32 %v4204_v5, %v4426_v30 }
 0x2a4   : > { %v2369_v28 = vsub.f32 %v4215_v50, %v4426_v30  ;;  %v2370_v60 = vsub.f32 %v4225_v18, %v4426_v30  ;;  %v2371_v10 = vsub.f32 %v4219_v0, %v4426_v30  ;;  %v2372_v16 = vsub.f32 %v4228_v61, %v4426_v30 }
 0x2a5   : > { %v2373_v59 = vsub.f32 %v4239_v12, %v4426_v30  ;;  %v2374_v63 = vsub.f32 %v4249_v3, %v4426_v30  ;;  %v2375_v5 = vsub.f32 %v4243_v20, %v4426_v30  ;;  %v2376_v50 = vsub.f32 %v4252_v27, %v4426_v30 }
 0x2a6   : > { %v2377_v18 = vsub.f32 %v4263_v42, %v4426_v30  ;;  %v2378_v0 = vsub.f32 %v4273_v56, %v4426_v30  ;;  %v2379_v61 = vsub.f32 %v4267_v58, %v4426_v30  ;;  %v2380_v3 = vsub.f32 %v4276_v11, %v4426_v30 }
 0x2a7   : > { %v2381_v20 = vsub.f32 %v4287_v32, %v4426_v30  ;;  %v2382_v27 = vsub.f32 %v4297_v36, %v4426_v30  ;;  %v2383_v42 = vsub.f32 %v4291_v41, %v4426_v30  ;;  %v2384_v56 = vsub.f32 %v4300_v37, %v4426_v30 }
 0x2a8   : > { %v2385_v58 = vsub.f32 %v4311_v17, %v4426_v30  ;;  %v2386_v2 = vsub.f32 %v4321_v19, %v4426_v30  ;;  %v2387_v11 = vsub.f32 %v4315_v57, %v4426_v30  ;;  %v2388_v32 = vsub.f32 %v4324_v29, %v4426_v30 }
 0x2a9   : > { %v2389_v36 = vsub.f32 %v4335_v4, %v4426_v30  ;;  %v2390_v41 = vsub.f32 %v4345_v62, %v4426_v30  ;;  %v2391_v17 = vsub.f32 %v4339_v25, %v4426_v30  ;;  %v2392_v19 = vsub.f32 %v4348_v38, %v4426_v30 }
 0x2aa   : > { %v2393_v57 = vsub.f32 %v4359_v35, %v4426_v30  ;;  %v2394_v4 = vsub.f32 %v4369_v51, %v4426_v30  ;;  %v2395_v62 = vsub.f32 %v4363_v9, %v4426_v30  ;;  %v2396_v45 = vsub.f32 %v4372_v21, %v4426_v30 }
 0x2ab   : > { %v2397_v25 = vsub.f32 %v4383_v55, %v4426_v30  ;;  %v2398_v38 = vsub.f32 %v4393_v40, %v4426_v30  ;;  %v2399_v35 = vsub.f32 %v4387_v43, %v4426_v30  ;;  %v2400_v51 = vsub.f32 %v4396_v49, %v4426_v30 }
 0x2af   : > { %v2346_v39 = vpop.permute.xlu1 %2345  ;;  %v2349_v47 = vpop.permute.xlu0 %2348 }
 0x2b0   : > { %v2354_v12 = vsel %vm2338_vm5, %v3600_v48, %v2346_v39 }
 0x2b1   : > { %v2355_v37 = vsel %vm2340_vm6, %v2354_v12, %v2349_v47 }
 0x2b3   : > { %v2352_v15 = vpop.permute.xlu1 %2351 }
 0x2b4   : > { %v2356_v29 = vsel %vm2342_vm7, %v2355_v37, %v2352_v15 }
 0x2b5   : > { %v2404_v54 = vrot.slane %v2356_v29, %v4156_v44 }
 0x2b7   : > { %v4512_v33 = vmul.f32 %v2404_v54, %v2361_v22  ;;  %v4514_v9 = vmul.f32 %v2404_v54, %v2362_v23  ;;  %v4516_v46 = vmul.f32 %v2404_v54, %v2363_v34  ;;  %v4518_v21 = vmul.f32 %v2404_v54, %v2364_v24 }
 0x2b8   : > { %v4520_v44 = vmul.f32 %v2404_v54, %v2365_v53  ;;  %v4522_v55 = vmul.f32 %v2404_v54, %v2366_v13  ;;  %v4524_v48 = vmul.f32 %v2404_v54, %v2367_v26  ;;  %v4526_v40 = vmul.f32 %v2404_v54, %v2368_v7 }
 0x2b9   : > { %v4528_v43 = vmul.f32 %v2404_v54, %v2369_v28  ;;  %v4530_v14 = vmul.f32 %v2404_v54, %v2370_v60  ;;  %v4532_v49 = vmul.f32 %v2404_v54, %v2371_v10  ;;  %v4534_v8 = vmul.f32 %v2404_v54, %v2372_v16 }
 0x2ba   : > { %v4536_v6 = vmul.f32 %v2404_v54, %v2373_v59  ;;  %v4538_v52 = vmul.f32 %v2404_v54, %v2374_v63  ;;  %v4540_v31 = vmul.f32 %v2404_v54, %v2375_v5  ;;  %v4542_v1 = vmul.f32 %v2404_v54, %v2376_v50 }
 0x2bb   : > { %v4544_v30 = vmul.f32 %v2404_v54, %v2377_v18  ;;  %v4546_v22 = vmul.f32 %v2404_v54, %v2378_v0  ;;  %v4548_v23 = vmul.f32 %v2404_v54, %v2379_v61  ;;  %v4550_v34 = vmul.f32 %v2404_v54, %v2380_v3 }
 0x2bc   : > { %v4552_v24 = vmul.f32 %v2404_v54, %v2381_v20  ;;  %v4554_v53 = vmul.f32 %v2404_v54, %v2382_v27  ;;  %v4556_v13 = vmul.f32 %v2404_v54, %v2383_v42  ;;  %v4558_v26 = vmul.f32 %v2404_v54, %v2384_v56 }
 0x2bd   : > { %v4560_v7 = vmul.f32 %v2404_v54, %v2385_v58  ;;  %v4562_v28 = vmul.f32 %v2404_v54, %v2386_v2  ;;  %v4564_v60 = vmul.f32 %v2404_v54, %v2387_v11  ;;  %v4566_v10 = vmul.f32 %v2404_v54, %v2388_v32 }
 0x2be   : > { %v4568_v16 = vmul.f32 %v2404_v54, %v2389_v36  ;;  %v4570_v59 = vmul.f32 %v2404_v54, %v2390_v41  ;;  %v4572_v63 = vmul.f32 %v2404_v54, %v2391_v17  ;;  %v4574_v5 = vmul.f32 %v2404_v54, %v2392_v19 }
 0x2bf   : > { %v4576_v50 = vmul.f32 %v2404_v54, %v2393_v57  ;;  %v4578_v39 = vmul.f32 %v2404_v54, %v2394_v4  ;;  %v4580_v18 = vmul.f32 %v2404_v54, %v2395_v62  ;;  %v4582_v0 = vmul.f32 %v2404_v54, %v2396_v45 }
 0x2c0   : > { %v4584_v61 = vmul.f32 %v2404_v54, %v2397_v25  ;;  %v4586_v12 = vmul.f32 %v2404_v54, %v2398_v38  ;;  %v4588_v47 = vmul.f32 %v2404_v54, %v2399_v35  ;;  %v4590_v3 = vmul.f32 %v2404_v54, %v2400_v51 }
 0x2c1   : > { %v2445_v20 = vmax.f32 %v4512_v33, 0.0  ;;  %v2446_v27 = vmax.f32 %v4514_v9, 0.0  ;;  %v2447_v42 = vmax.f32 %v4516_v46, 0.0  ;;  %v2448_v56 = vmax.f32 %v4518_v21, 0.0 }
 0x2c2   : > { %v2449_v58 = vmax.f32 %v4520_v44, 0.0  ;;  %v2450_v2 = vmax.f32 %v4522_v55, 0.0  ;;  %v2451_v11 = vmax.f32 %v4524_v48, 0.0  ;;  %v2452_v32 = vmax.f32 %v4526_v40, 0.0 }
 0x2c3   : > { %v2453_v36 = vmax.f32 %v4528_v43, 0.0  ;;  %v2454_v41 = vmax.f32 %v4530_v14, 0.0  ;;  %v2455_v37 = vmax.f32 %v4532_v49, 0.0  ;;  %v2456_v15 = vmax.f32 %v4534_v8, 0.0 }
 0x2c4   : > { %v2457_v17 = vmax.f32 %v4536_v6, 0.0  ;;  %v2458_v19 = vmax.f32 %v4538_v52, 0.0  ;;  %v2459_v57 = vmax.f32 %v4540_v31, 0.0  ;;  %v2460_v29 = vmax.f32 %v4542_v1, 0.0 }
 0x2c5   : > { %v2461_v4 = vmax.f32 %v4544_v30, 0.0  ;;  %v2462_v62 = vmax.f32 %v4546_v22, 0.0  ;;  %v2463_v45 = vmax.f32 %v4548_v23, 0.0  ;;  %v2464_v54 = vmax.f32 %v4550_v34, 0.0 }
 0x2c6   : > { %v2465_v25 = vmax.f32 %v4552_v24, 0.0  ;;  %v2466_v38 = vmax.f32 %v4554_v53, 0.0  ;;  %v2467_v35 = vmax.f32 %v4556_v13, 0.0  ;;  %v2468_v51 = vmax.f32 %v4558_v26, 0.0 }
 0x2c7   : > { %v2469_v33 = vmax.f32 %v4560_v7, 0.0  ;;  %v2470_v9 = vmax.f32 %v4562_v28, 0.0  ;;  %v2471_v46 = vmax.f32 %v4564_v60, 0.0  ;;  %v2472_v21 = vmax.f32 %v4566_v10, 0.0 }
 0x2c8   : > { %v2473_v44 = vmax.f32 %v4568_v16, 0.0  ;;  %v2474_v55 = vmax.f32 %v4570_v59, 0.0  ;;  %v2475_v48 = vmax.f32 %v4572_v63, 0.0  ;;  %v2476_v40 = vmax.f32 %v4574_v5, 0.0 }
 0x2c9   : > { %v2477_v43 = vmax.f32 %v4576_v50, 0.0  ;;  %v2478_v14 = vmax.f32 %v4578_v39, 0.0  ;;  %v2479_v49 = vmax.f32 %v4580_v18, 0.0  ;;  %v2480_v8 = vmax.f32 %v4582_v0, 0.0 }
 0x2ca   : > { %v2481_v6 = vmax.f32 %v4584_v61, 0.0  ;;  %v2482_v52 = vmax.f32 %v4586_v12, 0.0  ;;  %v2483_v31 = vmax.f32 %v4588_v47, 0.0  ;;  %v2484_v1 = vmax.f32 %v4590_v3, 0.0 }
 0x2cb   : > { %v2998_v30 = vpack.c.bf16 %v2446_v27, %v2445_v20  ;;  %v3003_v22 = vpack.c.bf16 %v2448_v56, %v2447_v42  ;;  %v3008_v23 = vpack.c.bf16 %v2450_v2, %v2449_v58  ;;  %v3013_v34 = vpack.c.bf16 %v2452_v32, %v2451_v11 }
 0x2cc   : > { %v3018_v24 = vpack.c.bf16 %v2454_v41, %v2453_v36  ;;  %v3023_v53 = vpack.c.bf16 %v2456_v15, %v2455_v37  ;;  %v3028_v13 = vpack.c.bf16 %v2458_v19, %v2457_v17  ;;  %v3033_v26 = vpack.c.bf16 %v2460_v29, %v2459_v57 }
 0x2cd   : > { %2999 = vst [vmem:[%s4639_s27] sm:$0xff] %v2998_v30   ;;  %3095 = vst [vmem:[%s4639_s27 + $0x8] sm:$0xff] %v3003_v22   ;;  %v3038_v7 = vpack.c.bf16 %v2462_v62, %v2461_v4  ;;  %v3043_v28 = vpack.c.bf16 %v2464_v54, %v2463_v45  ;;  %v3048_v60 = vpack.c.bf16 %v2466_v38, %v2465_v25 }
 0x2ce   : > { %3096 = vst [vmem:[%s4639_s27 + $0x10] sm:$0xff] %v3008_v23   ;;  %3097 = vst [vmem:[%s4639_s27 + $0x18] sm:$0xff] %v3013_v34   ;;  %v3053_v10 = vpack.c.bf16 %v2468_v51, %v2467_v35  ;;  %v3058_v16 = vpack.c.bf16 %v2470_v9, %v2469_v33  ;;  %v3063_v59 = vpack.c.bf16 %v2472_v21, %v2471_v46 }
 0x2cf   : > { %3098 = vst [vmem:[%s4639_s27 + $0x20] sm:$0xff] %v3018_v24   ;;  %3099 = vst [vmem:[%s4639_s27 + $0x28] sm:$0xff] %v3023_v53   ;;  %v3068_v63 = vpack.c.bf16 %v2474_v55, %v2473_v44  ;;  %v3073_v5 = vpack.c.bf16 %v2476_v40, %v2475_v48  ;;  %v3078_v50 = vpack.c.bf16 %v2478_v14, %v2477_v43 }
 0x2d0   : > { %3100 = vst [vmem:[%s4639_s27 + $0x30] sm:$0xff] %v3028_v13   ;;  %3101 = vst [vmem:[%s4639_s27 + $0x38] sm:$0xff] %v3033_v26   ;;  %v3083_v39 = vpack.c.bf16 %v2480_v8, %v2479_v49  ;;  %v3088_v18 = vpack.c.bf16 %v2482_v52, %v2481_v6  ;;  %v3093_v0 = vpack.c.bf16 %v2484_v1, %v2483_v31 }
 0x2d1   : > { %3102 = vst [vmem:[%s4639_s27 + $0x40] sm:$0xff] %v3038_v7   ;;  %3103 = vst [vmem:[%s4639_s27 + $0x48] sm:$0xff] %v3043_v28  }
 0x2d2   : > { %3104 = vst [vmem:[%s4639_s27 + $0x50] sm:$0xff] %v3048_v60   ;;  %3105 = vst [vmem:[%s4639_s27 + $0x58] sm:$0xff] %v3053_v10  }
 0x2d3   : > { %3106 = vst [vmem:[%s4639_s27 + $0x60] sm:$0xff] %v3058_v16   ;;  %3107 = vst [vmem:[%s4639_s27 + $0x68] sm:$0xff] %v3063_v59  }
 0x2d4   : > { %3108 = vst [vmem:[%s4639_s27 + $0x70] sm:$0xff] %v3068_v63   ;;  %3109 = vst [vmem:[%s4639_s27 + $0x78] sm:$0xff] %v3073_v5  }
 0x2d5   : > { %3110 = vst [vmem:[%s4639_s27 + $0x80] sm:$0xff] %v3078_v50   ;;  %3111 = vst [vmem:[%s4639_s27 + $0x88] sm:$0xff] %v3083_v39  }
 0x2d6   : > { %3112 = vst [vmem:[%s4639_s27 + $0x90] sm:$0xff] %v3088_v18   ;;  %3113 = vst [vmem:[%s4639_s27 + $0x98] sm:$0xff] %v3093_v0  }
 0x2d7   : > { %3614 = shalt.err (!%p3611_p3)
}
 0x2d8   : > { %s3615_s9 = scalar_lea.hbm %s4653_s30, 2560  ;;  %s3619_s17 = scalar_lea.hbm %s4717_s3, 5120 }
 0x2d9   : > { %p3616_p4 = scmp.ne.s32.totalorder %s4653_s30, %s3615_s9  ;;  %p3620_p9 = scmp.lt.u32.totalorder %s4653_s30, %s4717_s3 }
 0x2da   : > { %p3621_p10 = scmp.lt.u32.totalorder %s3619_s17, %s3615_s9  ;;  %p3623_p12 = scmp.lt.u32.totalorder %s3615_s9, %s4653_s30 }
 0x2db   : > { %p3617_p7 = pnand %p3616_p4, %p3728_p5 }
 0x2dc   : > { %p3622_p11 = por %p3621_p10, %p3620_p9 }
 0x2dd   : > { %p3618_p8 = pneg %p3617_p7 }
 0x2de   : > { %p3624_p13 = por %p3623_p12, %p3622_p11 }
 0x2e0   : > { %p3625_p0 = pnand %p3624_p13, %p3618_p8 }
 0x2e2   : > { %3628 = shalt.err (!%p3625_p0)
}
 0x2e3   : > { %s3669_s25 = smov 4  }
 0x2e4   : > { %3493 = dma.vmem_to_hbm [thread:$0]  (%p3728_p5), %s4659_s16, 2560, %s4653_s30, %s4671_s4, %s3667_s20, %s3667_s20, %s3669_s25  }
 0x2e5 PF: > { %p3499_p1 = scmp.ge.s32.totalorder %s3663_s15, 2  ;;  %s2714_s26 = sand.u32 1, %s3651_s12  }
 0x2e6   : > { %s2715_s27 = scalar_lea.sflag [#allocation3], %s2714_s26 }
 0x2e7   : > { %p3496_p2 = pnand %p3499_p1, %p3732_p6 }
 0x2e9   : > { %3646 = dma.done.wait (!%p3496_p2), %s2715_s27, 2560  }
 0x2ea   : > { %3648 = vsyncadd (!%p3496_p2), %s2715_s27, 4294964736  ;;  %p13_p3 = scmp.ge.s32.totalorder %s3715_s18, 4   ;;  %s4720_s12 = smov %s3655_s13 }
 0x2eb   : > { %s4721_s13 = smov %s3659_s14  ;;  %s4722_s14 = smov %s3726_s21 }
 0x2ec   : > { %s4723_s15 = smov %s3715_s18  ;;  %15 = sbr.rel (!%p13_p3) target bundleno = 3 (0x3), region = 70 }
 0x2f3   :  { %2720 = vsyncpa [#allocation3], 1 }
 0x2f4   :  { %2722 = vsyncpa [#allocation3 + $0x1], 1 }

</bundles_post_ra>
